<compile_context>
chip_gen: v5e
topology: v5e:2x2
jax: 0.10.0
libtpu: 0.0.40
codegen_flags: <defaults>
</compile_context>

<pallas_src>
import functools

import jax
import jax.numpy as jnp
from jax.experimental import pallas as pl
from jax.experimental.pallas import tpu as pltpu

# Constants from mole-bert's loader.py
NUM_ATOM_TYPE = 120
NUM_CHIRALITY_TAG = 3
NUM_BOND_TYPE = 6        # includes aromatic + self-loop (type 4 used for self loops)
NUM_BOND_DIRECTION = 3
NUM_EDGE_FEAT = NUM_BOND_TYPE + NUM_BOND_DIRECTION   # 9
BN_EPS = 1e-5

EDGE_BLOCK = 512         # target edge-tile size (multiple of 128)


def _round_up(x, m):
    return (x + m - 1) // m * m


# ---------------------------------------------------------------------------
# Fused kernel.  Grid = (num_layer [arbitrary], num_edge_blocks [arbitrary]).
# Per edge block:
#   eemb  = onehot(edge_attr) @ table[l]                    (tiny MXU matmul)
#   msgs  = A_src_blk @ h + eemb                            (gather via one-hot)
#   aggr += A_dst_blk^T @ msgs                              (scatter-add, fp32 acc)
# On the last edge block of a layer:
#   z = ReLU(aggr @ W1 + b1) @ W2 ; h = BN(z) [+ ReLU if not last layer]
# ---------------------------------------------------------------------------
def fused_gin_kernel(nreal_ref,                              # scalar prefetch (SMEM)
                     h0_ref, asrc_ref, adstt_ref, eattr_ref, etab_ref,
                     w1_ref, b1_ref, w2_ref, gamma_ref, beta_ref,
                     out_ref, h_scr, aggr_scr, *, write_all_layers):
    layer = pl.program_id(0)
    num_layer = pl.num_programs(0)
    eblk = pl.program_id(1)
    num_eblk = pl.num_programs(1)

    # Resident node features (bf16) initialised from the input embedding.
    @pl.when(jnp.logical_and(layer == 0, eblk == 0))
    def _():
        h_scr[...] = h0_ref[...]

    # fp32 neighbour-sum accumulator reset at the start of every layer.
    @pl.when(eblk == 0)
    def _():
        aggr_scr[...] = jnp.zeros_like(aggr_scr)

    # Edge embeddings for this edge block from the tiny per-layer table.
    eemb = jnp.dot(eattr_ref[...], etab_ref[0],
                   preferred_element_type=jnp.float32)        # (Ek, Dp) fp32
    # message = h[src] + edge_emb (gather of source rows via one-hot, MXU).
    msgs = jnp.dot(asrc_ref[...], h_scr[...],
                   preferred_element_type=jnp.float32) + eemb  # (Ek, Dp) fp32
    # scatter-add onto destination nodes via one-hot, fp32 accumulate.
    aggr_scr[...] += jnp.dot(adstt_ref[...], msgs.astype(jnp.bfloat16),
                             preferred_element_type=jnp.float32)  # (Np, Dp)

    # ---- layer epilogue: GIN MLP + BatchNorm (+ conditional ReLU) -----------
    @pl.when(eblk == num_eblk - 1)
    def _():
        # Second Linear's bias b2 omitted: BatchNorm subtracts the batch mean,
        # so a constant per-feature bias cancels exactly (variance unchanged).
        z = jnp.dot(aggr_scr[...].astype(jnp.bfloat16), w1_ref[0],
                    preferred_element_type=jnp.float32) + b1_ref[0]
        z = jnp.maximum(z, 0.0)
        z = jnp.dot(z.astype(jnp.bfloat16), w2_ref[0],
                    preferred_element_type=jnp.float32)        # (Np, Dp) fp32

        # BatchNorm1d, training mode, biased batch stats over REAL nodes only,
        # single pass: var = E[x^2] - E[x]^2 (padded node rows masked out).
        n_real = nreal_ref[0]
        inv_n = 1.0 / n_real.astype(jnp.float32)
        row = jax.lax.broadcasted_iota(jnp.int32, z.shape, 0)
        zm = jnp.where(row < n_real, z, 0.0)
        mean = jnp.sum(zm, axis=0, keepdims=True) * inv_n
        ex2 = jnp.sum(zm * zm, axis=0, keepdims=True) * inv_n
        var = jnp.maximum(ex2 - mean * mean, 0.0)
        zn = (z - mean) * jax.lax.rsqrt(var + BN_EPS) * gamma_ref[0] + beta_ref[0]

        # Fused conditional ReLU (all layers except the last); dropout with
        # drop_ratio=0 is the identity.
        relu_floor = jnp.where(layer == num_layer - 1,
                               jnp.float32(-3.0e38), jnp.float32(0.0))
        h_new = jnp.maximum(zn, relu_floor)

        h_scr[...] = h_new.astype(jnp.bfloat16)

        if write_all_layers:                 # concat / max / sum need every layer
            out_ref[0] = h_new
        else:                                # jk == "last": only final layer
            @pl.when(layer == num_layer - 1)
            def _():
                out_ref[...] = h_new


def fused_gin_layers(n_real, h0, a_src, a_dst_t, ea_onehot, etab,
                     w1, b1, w2, gamma, beta, *, edge_block, jk_last):
    """Run all GIN layers in a single pallas_call.

    n_real:    (1,)            int32  number of real (unpadded) nodes
    h0:        (Np, Dp)        bf16   initial node embeddings (padded)
    a_src:     (Ep, Np)        bf16   one-hot of edge sources
    a_dst_t:   (Np, Ep)        bf16   one-hot of edge destinations (transposed)
    ea_onehot: (Ep, Ap)        bf16   one-hot of (bond type | bond direction)
    etab:      (L, Ap, Dp)     bf16   per-layer edge-feature embedding tables
    w1/w2:     (L, Dp, Hp) / (L, Hp, Dp)  bf16
    b1:        (L, 1, Hp)      fp32
    gamma/beta:(L, 1, Dp)      fp32
    returns:   (Np, Dp) fp32 if jk_last else (L, Np, Dp) fp32
    """
    num_layer = etab.shape[0]
    n_pad, d_pad = h0.shape
    e_pad, a_pad = ea_onehot.shape
    hdn_pad = w1.shape[2]
    num_eblk = e_pad // edge_block

    if jk_last:
        out_shape = jax.ShapeDtypeStruct((n_pad, d_pad), jnp.float32)
        out_specs = pl.BlockSpec((n_pad, d_pad), lambda l, e, nr: (0, 0))
        out_bytes = n_pad * d_pad * 4
    else:
        out_shape = jax.ShapeDtypeStruct((num_layer, n_pad, d_pad), jnp.float32)
        out_specs = pl.BlockSpec((1, n_pad, d_pad), lambda l, e, nr: (l, 0, 0))
        out_bytes = 2 * n_pad * d_pad * 4

    # Scoped-VMEM sizing from the actual resident set (double-buffered streams,
    # once-DMA'd h0, scratches, temporaries) with generous headroom.
    vmem_est = (
        2 * edge_block * n_pad * 2 * 2                              # a_src + a_dst_t blocks
        + 2 * edge_block * a_pad * 2                                # attr one-hot block
        + 2 * n_pad * d_pad * 2                                     # h0
        + 2 * (a_pad * d_pad + d_pad * hdn_pad + hdn_pad * d_pad) * 2   # per-layer bf16 params
        + 2 * (hdn_pad + 2 * d_pad) * 4                             # b1 / gamma / beta
        + n_pad * d_pad * 2                                         # h scratch (bf16)
        + n_pad * d_pad * 4                                         # aggr scratch (fp32)
        + out_bytes
        + edge_block * d_pad * 4 + n_pad * hdn_pad * 4 + n_pad * d_pad * 4)  # temporaries
    vmem_limit = int(min(max(2 * vmem_est, 32 * 2 ** 20), 96 * 2 ** 20))

    kernel = functools.partial(fused_gin_kernel, write_all_layers=not jk_last)

    return pl.pallas_call(
        kernel,
        grid_spec=pltpu.PrefetchScalarGridSpec(
            num_scalar_prefetch=1,                       # n_real lives in SMEM
            grid=(num_layer, num_eblk),
            in_specs=[
                pl.BlockSpec((n_pad, d_pad), lambda l, e, nr: (0, 0)),        # h0 (fetched once)
                pl.BlockSpec((edge_block, n_pad), lambda l, e, nr: (e, 0)),   # A_src block
                pl.BlockSpec((n_pad, edge_block), lambda l, e, nr: (0, e)),   # A_dst^T block
                pl.BlockSpec((edge_block, a_pad), lambda l, e, nr: (e, 0)),   # edge-attr one-hot
                pl.BlockSpec((1, a_pad, d_pad), lambda l, e, nr: (l, 0, 0)),  # edge tables
                pl.BlockSpec((1, d_pad, hdn_pad), lambda l, e, nr: (l, 0, 0)),  # W1
                pl.BlockSpec((1, 1, hdn_pad), lambda l, e, nr: (l, 0, 0)),    # b1
                pl.BlockSpec((1, hdn_pad, d_pad), lambda l, e, nr: (l, 0, 0)),  # W2
                pl.BlockSpec((1, 1, d_pad), lambda l, e, nr: (l, 0, 0)),      # BN gamma
                pl.BlockSpec((1, 1, d_pad), lambda l, e, nr: (l, 0, 0)),      # BN beta
            ],
            out_specs=out_specs,
            scratch_shapes=[pltpu.VMEM((n_pad, d_pad), jnp.bfloat16),   # resident h
                            pltpu.VMEM((n_pad, d_pad), jnp.float32)],   # aggr accumulator
        ),
        out_shape=out_shape,
        compiler_params=pltpu.CompilerParams(
            dimension_semantics=("arbitrary", "arbitrary"),
            vmem_limit_bytes=vmem_limit),
    )(n_real, h0, a_src, a_dst_t, ea_onehot, etab, w1, b1, w2, gamma, beta)


# ---------------------------------------------------------------------------
# Parameter init (deterministic, xavier-uniform style like the torch module)
# ---------------------------------------------------------------------------
def _xavier(key, shape):
    fan_in, fan_out = shape[0], shape[1]
    bound = (6.0 / (fan_in + fan_out)) ** 0.5
    return jax.random.uniform(key, shape, jnp.float32, -bound, bound)


def init_params(key, emb_dim, num_layer):
    keys = jax.random.split(key, 2 + 6 * num_layer)
    params = {
        "x_emb1": _xavier(keys[0], (NUM_ATOM_TYPE, emb_dim)),
        "x_emb2": _xavier(keys[1], (NUM_CHIRALITY_TAG, emb_dim)),
        "layers": [],
    }
    hidden = 2 * emb_dim
    for l in range(num_layer):
        k = keys[2 + 6 * l: 2 + 6 * (l + 1)]
        params["layers"].append({
            "edge_emb1": _xavier(k[0], (NUM_BOND_TYPE, emb_dim)),
            "edge_emb2": _xavier(k[1], (NUM_BOND_DIRECTION, emb_dim)),
            "w1": _xavier(k[2], (emb_dim, hidden)),
            "b1": jax.random.uniform(k[3], (1, hidden), jnp.float32, -0.1, 0.1),
            "w2": _xavier(k[4], (hidden, emb_dim)),
            # b2 kept only for torch parameter parity: it cancels exactly under
            # BatchNorm (mean subtraction), so the kernel never consumes it.
            "b2": jax.random.uniform(k[5], (1, emb_dim), jnp.float32, -0.1, 0.1),
            # BatchNorm1d init: gamma=1, beta=0 (matches torch __init__)
            "gamma": jnp.ones((1, emb_dim), jnp.float32),
            "beta": jnp.zeros((1, emb_dim), jnp.float32),
        })
    return params


# ---------------------------------------------------------------------------
# DiscreteGNN forward (training mode, drop_ratio=0)
# ---------------------------------------------------------------------------
def discrete_gnn_forward(params, x, edge_index, edge_attr, num_layer, jk="last"):
    n = x.shape[0]
    emb_dim = params["x_emb1"].shape[1]
    hidden = params["layers"][0]["w1"].shape[1]

    # --- plain-JAX glue: embedding lookups, self loops, one-hot matrices ------
    h0 = params["x_emb1"][x[:, 0]] + params["x_emb2"][x[:, 1]]        # (N, D) fp32

    # add self loops (bond type 4, direction 0), as in GINConv.forward
    loops = jnp.stack([jnp.arange(n, dtype=edge_index.dtype)] * 2, axis=0)
    ei = jnp.concatenate([edge_index, loops], axis=1)                  # (2, Etot)
    sl_attr = jnp.concatenate(
        [jnp.full((n, 1), 4, dtype=edge_attr.dtype),
         jnp.zeros((n, 1), dtype=edge_attr.dtype)], axis=1)
    ea = jnp.concatenate([edge_attr, sl_attr], axis=0)                 # (Etot, 2)
    etot = ei.shape[1]

    # padded shapes: 128-aligned everywhere (lane-dense, bf16-sublane aligned)
    d_pad = _round_up(emb_dim, 128)
    hdn_pad = _round_up(hidden, 128)
    n_pad = _round_up(n, 128)
    a_pad = 128                                   # NUM_EDGE_FEAT=9 -> one lane tile
    e_min = _round_up(etot, 128)
    if e_min <= EDGE_BLOCK:
        e_blk, e_pad = e_min, e_min
    else:
        e_blk, e_pad = EDGE_BLOCK, _round_up(etot, EDGE_BLOCK)

    edge_iota = jnp.arange(e_pad, dtype=jnp.int32)
    node_iota = jnp.arange(n_pad, dtype=jnp.int32)
    valid = edge_iota < etot

    # incidence matrices built directly in kernel layouts (zero rows/cols for
    # padded edges / nodes) -- no XLA transpose of an O(N*Etot) array.
    src_p = jnp.where(valid, jnp.pad(ei[0].astype(jnp.int32), (0, e_pad - etot)), -1)
    dst_p = jnp.where(valid, jnp.pad(ei[1].astype(jnp.int32), (0, e_pad - etot)), -1)
    a_src = (src_p[:, None] == node_iota[None, :]).astype(jnp.bfloat16)    # (Ep, Np)
    a_dst_t = (node_iota[:, None] == dst_p[None, :]).astype(jnp.bfloat16)  # (Np, Ep)

    # edge-attr one-hot (Ep, Ap): cols [0..5]=bond type, [6..8]=bond direction.
    bt_col = jnp.where(valid, jnp.pad(ea[:, 0].astype(jnp.int32), (0, e_pad - etot)), -1)
    bd_col = jnp.where(
        valid,
        jnp.pad(ea[:, 1].astype(jnp.int32), (0, e_pad - etot)) + NUM_BOND_TYPE, -1)
    attr_iota = jnp.arange(a_pad, dtype=jnp.int32)
    ea_onehot = jnp.logical_or(bt_col[:, None] == attr_iota[None, :],
                               bd_col[:, None] == attr_iota[None, :]
                               ).astype(jnp.bfloat16)                      # (Ep, Ap)

    h0_p = jnp.pad(h0, ((0, n_pad - n), (0, d_pad - emb_dim)))

    # per-layer small tables / weights (padded & stacked along a leading axis)
    etab, w1, b1, w2, gamma, beta = [], [], [], [], [], []
    for lp in params["layers"]:
        tab = jnp.concatenate([lp["edge_emb1"], lp["edge_emb2"]], axis=0)  # (9, D)
        etab.append(jnp.pad(tab, ((0, a_pad - NUM_EDGE_FEAT), (0, d_pad - emb_dim))))
        w1.append(jnp.pad(lp["w1"], ((0, d_pad - emb_dim), (0, hdn_pad - hidden))))
        b1.append(jnp.pad(lp["b1"], ((0, 0), (0, hdn_pad - hidden))))
        w2.append(jnp.pad(lp["w2"], ((0, hdn_pad - hidden), (0, d_pad - emb_dim))))
        gamma.append(jnp.pad(lp["gamma"], ((0, 0), (0, d_pad - emb_dim))))
        beta.append(jnp.pad(lp["beta"], ((0, 0), (0, d_pad - emb_dim))))

    etab = jnp.stack(etab, 0).astype(jnp.bfloat16)       # (L, Ap, Dp)
    w1 = jnp.stack(w1, 0).astype(jnp.bfloat16)           # (L, Dp, Hp)
    b1 = jnp.stack(b1, 0)                                # (L, 1, Hp) fp32
    w2 = jnp.stack(w2, 0).astype(jnp.bfloat16)           # (L, Hp, Dp)
    gamma = jnp.stack(gamma, 0)                          # (L, 1, Dp) fp32
    beta = jnp.stack(beta, 0)                            # (L, 1, Dp) fp32

    n_real = jnp.array([n], dtype=jnp.int32)             # SMEM scalar (not baked)

    # --- single fused Pallas call over all layers -----------------------------
    outs = fused_gin_layers(n_real, h0_p.astype(jnp.bfloat16), a_src, a_dst_t,
                            ea_onehot, etab, w1, b1, w2, gamma, beta,
                            edge_block=e_blk, jk_last=(jk == "last"))

    if jk == "last":
        return outs[:n, :emb_dim]

    h_list = [h0] + [outs[l, :n, :emb_dim] for l in range(num_layer)]
    if jk == "concat":
        return jnp.concatenate(h_list, axis=1)
    elif jk == "max":
        return jnp.max(jnp.stack(h_list, axis=0), axis=0)
    elif jk == "sum":
        return jnp.sum(jnp.stack(h_list, axis=0), axis=0)
    raise ValueError(jk)


def get_codebook_indices(params, x, edge_index, edge_attr, num_layer):
    logits = discrete_gnn_forward(params, x, edge_index, edge_attr, num_layer)
    return jnp.argmax(logits, axis=-1)


# ---------------------------------------------------------------------------
if __name__ == "__main__":
    # Small demo graph (jk="last", single edge block).
    N, E, EMB_DIM, NUM_LAYER = 16, 24, 32, 3

    key = jax.random.PRNGKey(0)
    k_atom, k_chir, k_ei, k_bt, k_bd, k_params = jax.random.split(key, 6)

    x = jnp.stack(
        [jax.random.randint(k_atom, (N,), 0, NUM_ATOM_TYPE),
         jax.random.randint(k_chir, (N,), 0, NUM_CHIRALITY_TAG)], axis=1)   # (N, 2)
    edge_index = jax.random.randint(k_ei, (2, E), 0, N)                      # (2, E)
    edge_attr = jnp.stack(
        [jax.random.randint(k_bt, (E,), 0, 4),                               # bond types 0..3
         jax.random.randint(k_bd, (E,), 0, NUM_BOND_DIRECTION)], axis=1)     # (E, 2)

    params = init_params(k_params, EMB_DIM, NUM_LAYER)

    node_repr = discrete_gnn_forward(params, x, edge_index, edge_attr, NUM_LAYER,
                                     jk="last")
    jax.block_until_ready(node_repr)
    assert node_repr.shape == (N, EMB_DIM)
    assert bool(jnp.all(jnp.isfinite(node_repr)))

    codes = get_codebook_indices(params, x, edge_index, edge_attr, NUM_LAYER)
    jax.block_until_ready(codes)
    assert codes.shape == (N,)

    # Second, slightly larger graph: exercises multi-edge-block accumulation and
    # the all-layers output path (jk="sum").
    N2, E2 = 48, 600
    k2 = jax.random.split(jax.random.PRNGKey(1), 5)
    x2 = jnp.stack(
        [jax.random.randint(k2[0], (N2,), 0, NUM_ATOM_TYPE),
         jax.random.randint(k2[1], (N2,), 0, NUM_CHIRALITY_TAG)], axis=1)
    ei2 = jax.random.randint(k2[2], (2, E2), 0, N2)
    ea2 = jnp.stack(
        [jax.random.randint(k2[3], (E2,), 0, 4),
         jax.random.randint(k2[4], (E2,), 0, NUM_BOND_DIRECTION)], axis=1)
    out2 = discrete_gnn_forward(params, x2, ei2, ea2, NUM_LAYER, jk="sum")
    jax.block_until_ready(out2)
    assert out2.shape == (N2, EMB_DIM)
    assert bool(jnp.all(jnp.isfinite(out2)))

    print("KERNEL_OK")
</pallas_src>

<mosaic_0001>
module attributes {stable_mosaic.version = 11 : i64} {
  func.func @fused_gin_kernel(%arg0: i32, %arg1: i32, %arg2: memref<1xi32, #tpu.memory_space<smem>>, %arg3: memref<128x128xbf16, #tpu.memory_space<vmem>>, %arg4: memref<128x128xbf16, #tpu.memory_space<vmem>>, %arg5: memref<128x128xbf16, #tpu.memory_space<vmem>>, %arg6: memref<128x128xbf16, #tpu.memory_space<vmem>>, %arg7: memref<1x128x128xbf16, #tpu.memory_space<vmem>>, %arg8: memref<1x128x128xbf16, #tpu.memory_space<vmem>>, %arg9: memref<1x1x128xf32, #tpu.memory_space<vmem>>, %arg10: memref<1x128x128xbf16, #tpu.memory_space<vmem>>, %arg11: memref<1x1x128xf32, #tpu.memory_space<vmem>>, %arg12: memref<1x1x128xf32, #tpu.memory_space<vmem>>, %arg13: memref<128x128xf32, #tpu.memory_space<vmem>>, %arg14: memref<128x128xbf16, #tpu.memory_space<vmem>>, %arg15: memref<128x128xf32, #tpu.memory_space<vmem>>) attributes {dimension_semantics = [#tpu.dimension_semantics<arbitrary>, #tpu.dimension_semantics<arbitrary>], iteration_bounds = array<i64: 3, 1>, scalar_prefetch = 1 : i64, scratch_operands = 2 : i64, tpu.core_type = #tpu.core_type<tc>, window_params = [{pipeline_mode = #tpu.pipeline_mode<synchronous>, transform_indices = @transform_0, window_bounds = array<i64: 128, 128>}, {transform_indices = @transform_1, window_bounds = array<i64: 128, 128>}, {transform_indices = @transform_2, window_bounds = array<i64: 128, 128>}, {transform_indices = @transform_3, window_bounds = array<i64: 128, 128>}, {transform_indices = @transform_4, window_bounds = array<i64: 1, 128, 128>}, {transform_indices = @transform_5, window_bounds = array<i64: 1, 128, 128>}, {transform_indices = @transform_6, window_bounds = array<i64: 1, 1, 128>}, {transform_indices = @transform_7, window_bounds = array<i64: 1, 128, 128>}, {transform_indices = @transform_8, window_bounds = array<i64: 1, 1, 128>}, {transform_indices = @transform_9, window_bounds = array<i64: 1, 1, 128>}, {pipeline_mode = #tpu.pipeline_mode<synchronous>, transform_indices = @transform_10, window_bounds = array<i64: 128, 128>}]} {
    %c0_i32 = arith.constant 0 : i32
    %0 = arith.cmpi eq, %arg0, %c0_i32 : i32
    %c0_i32_0 = arith.constant 0 : i32
    %1 = arith.cmpi eq, %arg1, %c0_i32_0 : i32
    %2 = arith.andi %0, %1 : i1
    %3 = arith.extui %2 : i1 to i32
    %c0_i32_1 = arith.constant 0 : i32
    %4 = arith.cmpi ne, %3, %c0_i32_1 : i32
    scf.if %4 {
      %c0_22 = arith.constant 0 : index
      %c0_23 = arith.constant 0 : index
      %25 = vector.load %arg3[%c0_22, %c0_23] : memref<128x128xbf16, #tpu.memory_space<vmem>>, vector<128x128xbf16>
      %c0_24 = arith.constant 0 : index
      %c0_25 = arith.constant 0 : index
      %26 = vector.load %arg14[%c0_24, %c0_25] : memref<128x128xbf16, #tpu.memory_space<vmem>>, vector<128x128xbf16>
      tpu.vector_store %arg14[%c0_24, %c0_25], %25 {strides = array<i32>} : memref<128x128xbf16, #tpu.memory_space<vmem>>, vector<128x128xbf16>,
    } else {
    }
    %c0_i32_2 = arith.constant 0 : i32
    %5 = arith.cmpi eq, %arg1, %c0_i32_2 : i32
    %6 = arith.extui %5 : i1 to i32
    %c0_i32_3 = arith.constant 0 : i32
    %7 = arith.cmpi ne, %6, %c0_i32_3 : i32
    scf.if %7 {
      %cst_22 = arith.constant 0.000000e+00 : f32
      %25 = vector.broadcast %cst_22 : f32 to vector<128x128xf32>
      %c0_23 = arith.constant 0 : index
      %c0_24 = arith.constant 0 : index
      %26 = vector.load %arg15[%c0_23, %c0_24] : memref<128x128xf32, #tpu.memory_space<vmem>>, vector<128x128xf32>
      tpu.vector_store %arg15[%c0_23, %c0_24], %25 {strides = array<i32>} : memref<128x128xf32, #tpu.memory_space<vmem>>, vector<128x128xf32>,
    } else {
    }
    %c0 = arith.constant 0 : index
    %c0_4 = arith.constant 0 : index
    %8 = vector.load %arg6[%c0, %c0_4] : memref<128x128xbf16, #tpu.memory_space<vmem>>, vector<128x128xbf16>
    %c0_5 = arith.constant 0 : index
    %c0_6 = arith.constant 0 : index
    %c0_7 = arith.constant 0 : index
    %9 = vector.load %arg7[%c0_5, %c0_6, %c0_7] : memref<1x128x128xbf16, #tpu.memory_space<vmem>>, vector<1x128x128xbf16>
    %10 = vector.shape_cast %9 : vector<1x128x128xbf16> to vector<128x128xbf16>
    %cst = arith.constant dense<0.000000e+00> : vector<128x128xf32>
    %11 = tpu.matmul %8, %10, %cst {dimension_numbers = #tpu.dot_dimension_numbers<[1], [0], [0], [1], [0, 0, 1, 1], [], []>} : vector<128x128xbf16>, vector<128x128xbf16>, vector<128x128xf32> -> vector<128x128xf32>
    %c0_8 = arith.constant 0 : index
    %c0_9 = arith.constant 0 : index
    %12 = vector.load %arg4[%c0_8, %c0_9] : memref<128x128xbf16, #tpu.memory_space<vmem>>, vector<128x128xbf16>
    %c0_10 = arith.constant 0 : index
    %c0_11 = arith.constant 0 : index
    %13 = vector.load %arg14[%c0_10, %c0_11] : memref<128x128xbf16, #tpu.memory_space<vmem>>, vector<128x128xbf16>
    %cst_12 = arith.constant dense<0.000000e+00> : vector<128x128xf32>
    %14 = tpu.matmul %12, %13, %cst_12 {dimension_numbers = #tpu.dot_dimension_numbers<[1], [0], [0], [1], [0, 0, 1, 1], [], []>} : vector<128x128xbf16>, vector<128x128xbf16>, vector<128x128xf32> -> vector<128x128xf32>
    %15 = arith.addf %14, %11 : vector<128x128xf32>
    %c0_13 = arith.constant 0 : index
    %c0_14 = arith.constant 0 : index
    %16 = vector.load %arg15[%c0_13, %c0_14] : memref<128x128xf32, #tpu.memory_space<vmem>>, vector<128x128xf32>
    %c0_15 = arith.constant 0 : index
    %c0_16 = arith.constant 0 : index
    %17 = vector.load %arg5[%c0_15, %c0_16] : memref<128x128xbf16, #tpu.memory_space<vmem>>, vector<128x128xbf16>
    %18 = arith.truncf %15 : vector<128x128xf32> to vector<128x128xbf16>
    %cst_17 = arith.constant dense<0.000000e+00> : vector<128x128xf32>
    %19 = tpu.matmul %17, %18, %cst_17 {dimension_numbers = #tpu.dot_dimension_numbers<[1], [0], [0], [1], [0, 0, 1, 1], [], []>} : vector<128x128xbf16>, vector<128x128xbf16>, vector<128x128xf32> -> vector<128x128xf32>
    %20 = arith.addf %16, %19 : vector<128x128xf32>
    %c0_18 = arith.constant 0 : index
    %c0_19 = arith.constant 0 : index
    %21 = vector.load %arg15[%c0_18, %c0_19] : memref<128x128xf32, #tpu.memory_space<vmem>>, vector<128x128xf32>
    tpu.vector_store %arg15[%c0_18, %c0_19], %20 {strides = array<i32>} : memref<128x128xf32, #tpu.memory_space<vmem>>, vector<128x128xf32>,
    %c0_i32_20 = arith.constant 0 : i32
    %22 = arith.cmpi eq, %arg1, %c0_i32_20 : i32
    %23 = arith.extui %22 : i1 to i32
    %c0_i32_21 = arith.constant 0 : i32
    %24 = arith.cmpi ne, %23, %c0_i32_21 : i32
    scf.if %24 {
      %c0_22 = arith.constant 0 : index
      %c0_23 = arith.constant 0 : index
      %25 = vector.load %arg15[%c0_22, %c0_23] : memref<128x128xf32, #tpu.memory_space<vmem>>, vector<128x128xf32>
      %26 = arith.truncf %25 : vector<128x128xf32> to vector<128x128xbf16>
      %c0_24 = arith.constant 0 : index
      %c0_25 = arith.constant 0 : index
      %c0_26 = arith.constant 0 : index
      %27 = vector.load %arg8[%c0_24, %c0_25, %c0_26] : memref<1x128x128xbf16, #tpu.memory_space<vmem>>, vector<1x128x128xbf16>
      %28 = vector.shape_cast %27 : vector<1x128x128xbf16> to vector<128x128xbf16>
      %cst_27 = arith.constant dense<0.000000e+00> : vector<128x128xf32>
      %29 = tpu.matmul %26, %28, %cst_27 {dimension_numbers = #tpu.dot_dimension_numbers<[1], [0], [0], [1], [0, 0, 1, 1], [], []>} : vector<128x128xbf16>, vector<128x128xbf16>, vector<128x128xf32> -> vector<128x128xf32>
      %c0_28 = arith.constant 0 : index
      %c0_29 = arith.constant 0 : index
      %c0_30 = arith.constant 0 : index
      %30 = vector.load %arg9[%c0_28, %c0_29, %c0_30] : memref<1x1x128xf32, #tpu.memory_space<vmem>>, vector<1x1x128xf32>
      %31 = vector.shape_cast %30 : vector<1x1x128xf32> to vector<1x128xf32>
      %32 = vector.broadcast %31 : vector<1x128xf32> to vector<128x128xf32>
      %33 = arith.addf %29, %32 : vector<128x128xf32>
      %cst_31 = arith.constant 0.000000e+00 : f32
      %34 = vector.broadcast %cst_31 : f32 to vector<128x128xf32>
      %35 = arith.maximumf %33, %34 : vector<128x128xf32>
      %36 = arith.truncf %35 : vector<128x128xf32> to vector<128x128xbf16>
      %c0_32 = arith.constant 0 : index
      %c0_33 = arith.constant 0 : index
      %c0_34 = arith.constant 0 : index
      %37 = vector.load %arg10[%c0_32, %c0_33, %c0_34] : memref<1x128x128xbf16, #tpu.memory_space<vmem>>, vector<1x128x128xbf16>
      %38 = vector.shape_cast %37 : vector<1x128x128xbf16> to vector<128x128xbf16>
      %cst_35 = arith.constant dense<0.000000e+00> : vector<128x128xf32>
      %39 = tpu.matmul %36, %38, %cst_35 {dimension_numbers = #tpu.dot_dimension_numbers<[1], [0], [0], [1], [0, 0, 1, 1], [], []>} : vector<128x128xbf16>, vector<128x128xbf16>, vector<128x128xf32> -> vector<128x128xf32>
      %c0_36 = arith.constant 0 : index
      %40 = memref.load %arg2[%c0_36] : memref<1xi32, #tpu.memory_space<smem>>
      %41 = arith.sitofp %40 : i32 to f32
      %cst_37 = arith.constant 1.000000e+00 : f32
      %42 = arith.divf %cst_37, %41 : f32
      %43 = tpu.iota {dimensions = array<i32: 0>} : vector<128x128xi32>
      %44 = vector.broadcast %40 : i32 to vector<128x128xi32>
      %45 = arith.cmpi slt, %43, %44 : vector<128x128xi32>
      %cst_38 = arith.constant 0.000000e+00 : f32
      %46 = vector.broadcast %cst_38 : f32 to vector<128x128xf32>
      %47 = arith.select %45, %39, %46 : vector<128x128xi1>, vector<128x128xf32>
      %cst_39 = arith.constant dense<0.000000e+00> : vector<128xf32>
      %48 = vector.multi_reduction <add>, %47, %cst_39 [0] : vector<128x128xf32> to vector<128xf32>
      %49 = vector.shape_cast %48 : vector<128xf32> to vector<1x128xf32>
      %50 = vector.broadcast %42 : f32 to vector<1x128xf32>
      %51 = arith.mulf %49, %50 : vector<1x128xf32>
      %52 = arith.mulf %47, %47 : vector<128x128xf32>
      %cst_40 = arith.constant dense<0.000000e+00> : vector<128xf32>
      %53 = vector.multi_reduction <add>, %52, %cst_40 [0] : vector<128x128xf32> to vector<128xf32>
      %54 = vector.shape_cast %53 : vector<128xf32> to vector<1x128xf32>
      %55 = vector.broadcast %42 : f32 to vector<1x128xf32>
      %56 = arith.mulf %54, %55 : vector<1x128xf32>
      %57 = arith.mulf %51, %51 : vector<1x128xf32>
      %58 = arith.subf %56, %57 : vector<1x128xf32>
      %cst_41 = arith.constant 0.000000e+00 : f32
      %59 = vector.broadcast %cst_41 : f32 to vector<1x128xf32>
      %60 = arith.maximumf %58, %59 : vector<1x128xf32>
      %61 = vector.broadcast %51 : vector<1x128xf32> to vector<128x128xf32>
      %62 = arith.subf %39, %61 : vector<128x128xf32>
      %cst_42 = arith.constant 9.99999974E-6 : f32
      %63 = vector.broadcast %cst_42 : f32 to vector<1x128xf32>
      %64 = arith.addf %60, %63 : vector<1x128xf32>
      %65 = math.rsqrt %64 : vector<1x128xf32>
      %66 = vector.broadcast %65 : vector<1x128xf32> to vector<128x128xf32>
      %67 = arith.mulf %62, %66 : vector<128x128xf32>
      %c0_43 = arith.constant 0 : index
      %c0_44 = arith.constant 0 : index
      %c0_45 = arith.constant 0 : index
      %68 = vector.load %arg11[%c0_43, %c0_44, %c0_45] : memref<1x1x128xf32, #tpu.memory_space<vmem>>, vector<1x1x128xf32>
      %69 = vector.shape_cast %68 : vector<1x1x128xf32> to vector<1x128xf32>
      %70 = vector.broadcast %69 : vector<1x128xf32> to vector<128x128xf32>
      %71 = arith.mulf %67, %70 : vector<128x128xf32>
      %c0_46 = arith.constant 0 : index
      %c0_47 = arith.constant 0 : index
      %c0_48 = arith.constant 0 : index
      %72 = vector.load %arg12[%c0_46, %c0_47, %c0_48] : memref<1x1x128xf32, #tpu.memory_space<vmem>>, vector<1x1x128xf32>
      %73 = vector.shape_cast %72 : vector<1x1x128xf32> to vector<1x128xf32>
      %74 = vector.broadcast %73 : vector<1x128xf32> to vector<128x128xf32>
      %75 = arith.addf %71, %74 : vector<128x128xf32>
      %c2_i32 = arith.constant 2 : i32
      %76 = arith.cmpi eq, %arg0, %c2_i32 : i32
      %cst_49 = arith.constant -3.000000e+38 : f32
      %cst_50 = arith.constant 0.000000e+00 : f32
      %77 = arith.select %76, %cst_49, %cst_50 : f32
      %78 = vector.broadcast %77 : f32 to vector<128x128xf32>
      %79 = arith.maximumf %75, %78 : vector<128x128xf32>
      %80 = arith.truncf %79 : vector<128x128xf32> to vector<128x128xbf16>
      %c0_51 = arith.constant 0 : index
      %c0_52 = arith.constant 0 : index
      %81 = vector.load %arg14[%c0_51, %c0_52] : memref<128x128xbf16, #tpu.memory_space<vmem>>, vector<128x128xbf16>
      tpu.vector_store %arg14[%c0_51, %c0_52], %80 {strides = array<i32>} : memref<128x128xbf16, #tpu.memory_space<vmem>>, vector<128x128xbf16>,
      %c2_i32_53 = arith.constant 2 : i32
      %82 = arith.cmpi eq, %arg0, %c2_i32_53 : i32
      %83 = arith.extui %82 : i1 to i32
      %c0_i32_54 = arith.constant 0 : i32
      %84 = arith.cmpi ne, %83, %c0_i32_54 : i32
      scf.if %84 {
        %c0_55 = arith.constant 0 : index
        %c0_56 = arith.constant 0 : index
        %85 = vector.load %arg13[%c0_55, %c0_56] : memref<128x128xf32, #tpu.memory_space<vmem>>, vector<128x128xf32>
        tpu.vector_store %arg13[%c0_55, %c0_56], %79 {strides = array<i32>} : memref<128x128xf32, #tpu.memory_space<vmem>>, vector<128x128xf32>,
      } else {
      }
    } else {
    }
    return
  }
  func.func @transform_0(%arg0: i32, %arg1: i32, %arg2: memref<1xi32, #tpu.memory_space<smem>>) -> (i32, i32) {
    %c0_i32 = arith.constant 0 : i32
    %c0_i32_0 = arith.constant 0 : i32
    %c0_i32_1 = arith.constant 0 : i32
    return %c0_i32, %c0_i32_0 : i32, i32
  }
  func.func @transform_1(%arg0: i32, %arg1: i32, %arg2: memref<1xi32, #tpu.memory_space<smem>>) -> (i32, i32) {
    %c0_i32 = arith.constant 0 : i32
    %c0_i32_0 = arith.constant 0 : i32
    return %arg1, %c0_i32 : i32, i32
  }
  func.func @transform_2(%arg0: i32, %arg1: i32, %arg2: memref<1xi32, #tpu.memory_space<smem>>) -> (i32, i32) {
    %c0_i32 = arith.constant 0 : i32
    %c0_i32_0 = arith.constant 0 : i32
    return %c0_i32, %arg1 : i32, i32
  }
  func.func @transform_3(%arg0: i32, %arg1: i32, %arg2: memref<1xi32, #tpu.memory_space<smem>>) -> (i32, i32) {
    %c0_i32 = arith.constant 0 : i32
    %c0_i32_0 = arith.constant 0 : i32
    return %arg1, %c0_i32 : i32, i32
  }
  func.func @transform_4(%arg0: i32, %arg1: i32, %arg2: memref<1xi32, #tpu.memory_space<smem>>) -> (i32, i32, i32) {
    %c0_i32 = arith.constant 0 : i32
    %c0_i32_0 = arith.constant 0 : i32
    %c0_i32_1 = arith.constant 0 : i32
    return %arg0, %c0_i32, %c0_i32_0 : i32, i32, i32
  }
  func.func @transform_5(%arg0: i32, %arg1: i32, %arg2: memref<1xi32, #tpu.memory_space<smem>>) -> (i32, i32, i32) {
    %c0_i32 = arith.constant 0 : i32
    %c0_i32_0 = arith.constant 0 : i32
    %c0_i32_1 = arith.constant 0 : i32
    return %arg0, %c0_i32, %c0_i32_0 : i32, i32, i32
  }
  func.func @transform_6(%arg0: i32, %arg1: i32, %arg2: memref<1xi32, #tpu.memory_space<smem>>) -> (i32, i32, i32) {
    %c0_i32 = arith.constant 0 : i32
    %c0_i32_0 = arith.constant 0 : i32
    %c0_i32_1 = arith.constant 0 : i32
    return %arg0, %c0_i32, %c0_i32_0 : i32, i32, i32
  }
  func.func @transform_7(%arg0: i32, %arg1: i32, %arg2: memref<1xi32, #tpu.memory_space<smem>>) -> (i32, i32, i32) {
    %c0_i32 = arith.constant 0 : i32
    %c0_i32_0 = arith.constant 0 : i32
    %c0_i32_1 = arith.constant 0 : i32
    return %arg0, %c0_i32, %c0_i32_0 : i32, i32, i32
  }
  func.func @transform_8(%arg0: i32, %arg1: i32, %arg2: memref<1xi32, #tpu.memory_space<smem>>) -> (i32, i32, i32) {
    %c0_i32 = arith.constant 0 : i32
    %c0_i32_0 = arith.constant 0 : i32
    %c0_i32_1 = arith.constant 0 : i32
    return %arg0, %c0_i32, %c0_i32_0 : i32, i32, i32
  }
  func.func @transform_9(%arg0: i32, %arg1: i32, %arg2: memref<1xi32, #tpu.memory_space<smem>>) -> (i32, i32, i32) {
    %c0_i32 = arith.constant 0 : i32
    %c0_i32_0 = arith.constant 0 : i32
    %c0_i32_1 = arith.constant 0 : i32
    return %arg0, %c0_i32, %c0_i32_0 : i32, i32, i32
  }
  func.func @transform_10(%arg0: i32, %arg1: i32, %arg2: memref<1xi32, #tpu.memory_space<smem>>) -> (i32, i32) {
    %c0_i32 = arith.constant 0 : i32
    %c0_i32_0 = arith.constant 0 : i32
    %c0_i32_1 = arith.constant 0 : i32
    return %c0_i32, %c0_i32_0 : i32, i32
  }
}

</mosaic_0001>

<bundles_post_ra>
// kernel: tpu_custom_call.1
= control target key start
LH: loop header
LB: loop body
LE: loop exit
PB: predicated region body
PF: predicated region fallthrough
CT: control target
= control target key end

     0   :  { %s3183_s0 = inlined_call_operand.<no memory space> [shape: s32[1], index: 0, kind: input, shape index: {}]   ;;  %s3184_s1 = inlined_call_operand.hbm [shape: bf16[128,128], index: 1, kind: input, shape index: {}]   ;;  %s3185_s2 = inlined_call_operand.hbm [shape: bf16[128,128], index: 2, kind: input, shape index: {}]   ;;  %s3186_s3 = inlined_call_operand.hbm [shape: bf16[128,128], index: 3, kind: input, shape index: {}]   ;;  %s3187_s4 = inlined_call_operand.hbm [shape: bf16[128,128], index: 4, kind: input, shape index: {}]   ;;  %s3188_s5 = inlined_call_operand.hbm [shape: bf16[3,128,128], index: 5, kind: input, shape index: {}]   ;;  %s3189_s6 = inlined_call_operand.hbm [shape: bf16[3,128,128], index: 6, kind: input, shape index: {}]   ;;  %s3190_s7 = inlined_call_operand.vmem [shape: f32[3,1,128], index: 7, kind: input, shape index: {}]   ;;  %s3191_s8 = inlined_call_operand.hbm [shape: bf16[3,128,128], index: 8, kind: input, shape index: {}]   ;;  %s3192_s9 = inlined_call_operand.vmem [shape: f32[3,1,128], index: 9, kind: input, shape index: {}]   ;;  %s3193_s10 = inlined_call_operand.vmem [shape: f32[3,1,128], index: 10, kind: input, shape index: {}]   ;;  %s3194_s11 = inlined_call_operand.hbm [shape: f32[128,128], index: 11, kind: output, shape index: {}]  }
   0x1   :  { %3202 = sst [smem:[#allocation27_spill]] %s3184_s1 }
   0x2   :  { %3203 = sst [smem:[#allocation28_spill]] %s3185_s2 }
   0x3   :  { %3204 = sst [smem:[#allocation29_spill]] %s3188_s5 }
   0x4   :  { %3205 = sst [smem:[#allocation30_spill]] %s3194_s11 }
   0x5   :  { %16 = sst [smem:[#allocation5]] %s3183_s0 }
   0x6   :  { %17 = vsyncpa [#allocation7], 0 }
   0x7   :  { %18 = vsyncpa [#allocation10], 0 }
   0x8   :  { %19 = vsyncpa [#allocation13], 0 }
   0x9   :  { %20 = vsyncpa [#allocation8], 0  ;;  %s2807_s19 = smov 0   ;;  %s2809_s20 = smov 0  }
   0xa   :  { %s2811_s21 = smov 0   ;;  %s2813_s22 = smov 0  }
   0xb   :  { %s2815_s23 = smov 0   ;;  %s2817_s24 = smov 0  }
   0xc LB: > { %3206 = sst [smem:[#allocation23_spill]] %s2721_s21  ;;  %s2836_s0 = sadd.s32 4294967295, %s2733_s24   ;;  %s2733_s24 = sphi %s2817_s24, %s26_s24   ;;  %s2729_s23 = sphi %s2815_s23, %s3224_s23   ;;  %s2725_s22 = sphi %s2813_s22, %s3223_s22   ;;  %s2721_s21 = sphi %s2811_s21, %s3222_s21   ;;  %s2717_s20 = sphi %s2809_s20, %s3226_s20   ;;  %s2713_s19 = sphi %s2807_s19, %s3225_s19  }
   0xd   : > { %3207 = sst [smem:[#allocation24_spill]] %s2729_s23  ;;  %p157_p0 = scmp.ne.s32.totalorder %s2717_s20, %s2713_s19 }
   0xe   : > { %p158_p1 = scmp.eq.s32.totalorder %s2836_s0, 0  ;;  %p1919_p2 = scmp.ge.s32.totalorder %s2733_s24, 1 }
   0xf   : > { %p319_p3 = scmp.lt.s32.totalorder %s2733_s24, 4  ;;  %s3209_s1 = sld [smem:[#allocation27_spill]] }
  0x10   : > { %p2844_p4 = por %p158_p1, %p157_p0  ;;  %s2735_s30 = smov [#allocation6]  }
  0x11   : > { %p2851_p5 = pnand %p1919_p2, %p319_p3  ;;  %s332_s12 = sshll.u32 %s2735_s30, 4  ;;  %s333_s12 = int_to_ptr.vmem [resolvable:$true] %s332_s12 }
  0x12   : > { %s3195_s14 = smov 64   ;;  %s3197_s15 = smov 4  }
  0x13   : > { %p2331_p6 = pneg %p2851_p5  ;;  %s38_s16 = sadd.s32 1, %s2729_s23 }
  0x14   : > { %p40_p8 = scmp.ge.s32.totalorder %s38_s16, 3  ;;  %s144_s17 = sadd.s32 1, %s2721_s21 }
  0x15   : > { %s330_s28 = sshll.u32 %s3209_s1, 4  ;;  %p2859_p7 = pnand %p2331_p6, %p158_p1  ;;  %s331_s28 = int_to_ptr.hbm [resolvable:$true] %s330_s28 }
  0x16   : > { %p151_p9 = scmp.ne.s32.totalorder %s2721_s21, %s2717_s20  ;;  %p152_p10 = scmp.eq.s32.totalorder %s2733_s24, 0 }
  0x17   : > { %2334 = dma.hbm_to_vmem [thread:$0]  (!%p2859_p7), %s331_s28, 1024, %s333_s12, [#allocation7], %s3195_s14, %s3195_s14, %s3197_s15  }
  0x18   : > { %s3228_s16 = smov (%p40_p8, %s38_s16), 0  ;;  %p2875_p11 = por %p152_p10, %p151_p9 }
  0x19   : > { %3212 = sst [smem:[#allocation25_spill]] %s3228_s16  ;;  %p2358_p12 = scmp.lt.s32.totalorder %s2733_s24, 3 }
  0x1a   : > { %s141_s19 = ssub.s32 %s2729_s23, %s3228_s16  ;;  %s396_s26 = sand.u32 1, %s2733_s24  }
  0x1b   : > { %p142_p13 = scmp.eq.s32.totalorder %s141_s19, 0  ;;  %s398_s27 = sand.u32 1, %s2721_s21  }
  0x1c   : > { %s2885_s28 = sshll.u32 %s2729_s23, 6  ;;  %s2890_s12 = sshll.u32 %s398_s27, 6 }
  0x1d   : > { %s2888_s30 = scalar_select %p142_p13, %s2721_s21, %s144_s17  }
  0x1e   : > { %s3215_s5 = sld [smem:[#allocation29_spill]]  ;;  %s400_s16 = scalar_lea.vmem [#allocation14], %s2890_s12 }
  0x1f   : > { %3214 = sst [smem:[#allocation26_spill]] %s2888_s30  ;;  %s408_s19 = sshll.u32 %s400_s16, 4  ;;  %s409_s19 = int_to_ptr.vmem [resolvable:$true] %s408_s19 }
  0x20   : > { %p2901_p0 = pnand %p2358_p12, %p2875_p11  ;;  %s3217_s2 = sld [smem:[#allocation28_spill]] }
  0x21   : > { %s2908_s15 = scalar_lea.sflag [#allocation7], %s396_s26  ;;  %s2738_s16 = smov [#allocation9]  }
  0x22   : > { %s349_s18 = sshll.u32 %s2738_s16, 4  ;;  %s427_s23 = scalar_lea.hbm %s3189_s6, %s2885_s28  ;;  %s350_s18 = int_to_ptr.vmem [resolvable:$true] %s349_s18 }
  0x23   : > { %s428_s26 = sshll.u32 %s427_s23, 4  ;;  %s422_s27 = scalar_lea.vmem [#allocation15], %s2890_s12  ;;  %s429_s26 = int_to_ptr.hbm [resolvable:$true] %s428_s26 }
  0x24   : > { %s405_s1 = scalar_lea.hbm %s3215_s5, %s2885_s28  ;;  %s3219_s5 = smov 64  }
  0x25   : > { %s406_s11 = sshll.u32 %s405_s1, 4  ;;  %s3218_s1 = smov 4   ;;  %s407_s11 = int_to_ptr.hbm [resolvable:$true] %s406_s11 }
  0x26   : > { %s347_s14 = sshll.u32 %s3217_s2, 4  ;;  %s430_s2 = sshll.u32 %s422_s27, 4  ;;  %s348_s14 = int_to_ptr.hbm [resolvable:$true] %s347_s14  ;;  %s431_s2 = int_to_ptr.vmem [resolvable:$true] %s430_s2 }
  0x27   : > { %2347 = dma.hbm_to_vmem [thread:$0]  (!%p2901_p0), %s407_s11, 1024, %s409_s19, %s2908_s15, %s3219_s5, %s3219_s5, %s3218_s1  }
  0x28   : > { %2337 = dma.hbm_to_vmem [thread:$0]  (!%p2859_p7), %s348_s14, 1024, %s350_s18, [#allocation10], %s3219_s5, %s3219_s5, %s3218_s1  }
  0x29   : > { %2350 = dma.hbm_to_vmem [thread:$0]  (!%p2901_p0), %s429_s26, 1024, %s431_s2, %s2908_s15, %s3219_s5, %s3219_s5, %s3218_s1  }
  0x2a   : > { %s363_s30 = sshll.u32 %s3186_s3, 4  ;;  %s2739_s19 = smov [#allocation11]   ;;  %s364_s30 = int_to_ptr.hbm [resolvable:$true] %s363_s30 }
  0x2b   : > { %s365_s14 = sshll.u32 %s2739_s19, 4  ;;  %s380_s23 = sshll.u32 %s3187_s4, 4  ;;  %s366_s14 = int_to_ptr.vmem [resolvable:$true] %s365_s14  ;;  %s381_s23 = int_to_ptr.hbm [resolvable:$true] %s380_s23 }
  0x2c   : > { %2340 = dma.hbm_to_vmem [thread:$0]  (!%p2859_p7), %s364_s30, 1024, %s366_s14, [#allocation10], %s3219_s5, %s3219_s5, %s3218_s1  }
  0x2d   : > { %s2740_s2 = smov [#allocation12]   ;;  %s455_s21 = scalar_lea.hbm %s3191_s8, %s2885_s28 }
  0x2e   : > { %s382_s26 = sshll.u32 %s2740_s2, 4  ;;  %s456_s19 = sshll.u32 %s455_s21, 4  ;;  %s383_s26 = int_to_ptr.vmem [resolvable:$true] %s382_s26  ;;  %s457_s19 = int_to_ptr.hbm [resolvable:$true] %s456_s19 }
  0x2f   : > { %2343 = dma.hbm_to_vmem [thread:$0]  (!%p2859_p7), %s381_s23, 1024, %s383_s26, [#allocation13], %s3219_s5, %s3219_s5, %s3218_s1  }
  0x30   : > { %s450_s16 = scalar_lea.vmem [#allocation16], %s2890_s12  ;;  %482 = sbr.rel (%p2851_p5) target bundleno = 1045 (0x415), region = 60 }
  0x31   : > { %s458_s18 = sshll.u32 %s450_s16, 4  ;;  %s459_s18 = int_to_ptr.vmem [resolvable:$true] %s458_s18 }
  0x32   : > { %2353 = dma.hbm_to_vmem [thread:$0]  (!%p2901_p0), %s457_s19, 1024, %s459_s18, %s2908_s15, %s3219_s5, %s3219_s5, %s3218_s1  }
  0x35   : > { %2692 = dma.done.wait (%p158_p1), [#allocation7], 1024  }
  0x36   : > { %2694 = vsyncadd (%p158_p1), [#allocation7], 4294966272 }
  0x37   : > { %2696 = dma.done.wait (%p158_p1), [#allocation10], 2048  }
  0x38   : > { %2698 = vsyncadd (%p158_p1), [#allocation10], 4294965248 }
  0x39   : > { %2700 = dma.done.wait (%p158_p1), [#allocation13], 1024  }
  0x3a   : > { %2702 = vsyncadd (%p158_p1), [#allocation13], 4294966272  ;;  %s504_s5 = sand.u32 1, %s2836_s0   ;;  %s506_s29 = sand.u32 1, %s2717_s20  }
  0x3b   : > { %s1939_s13 = sshll.u32 %s506_s29, 6  ;;  %s505_s28 = scalar_lea.sflag [#allocation7], %s504_s5 }
  0x3c   : > { %s2975_s12 = scalar_lea.vmem [#allocation14], %s1939_s13 }
  0x3d   : > { %2704 = dma.done.wait (%p2844_p4), %s505_s28, 3072  }
  0x3e   : > { %2706 = vsyncadd (%p2844_p4), %s505_s28, 4294964224  ;;  %p582_p2 = scmp.lt.s32.totalorder %s2725_s22, 2  ;;  %p591_p3 = scmp.eq.s32.totalorder %s2725_s22, 0 }
  0x3f   : > { %s2998_s11 = scalar_lea.vmem [#allocation15], %s1939_s13  ;;  %s3000_s21 = scalar_lea.vmem [#allocation16], %s1939_s13  ;;  %v597_v0 = vld [vmem:[#allocation6] sm:$0xff] (%p591_p3)   ;;  %v599_v1 = vld [vmem:[#allocation6 + $0x8] sm:$0xff] (%p591_p3)   ;;  %v601_v2 = vld [vmem:[#allocation6 + $0x10] sm:$0xff] (%p591_p3)  }
  0x40   : > { %s2984_s17 = scalar_select %p582_p2, %s2725_s22, 2  ;;  %613 = vst [vmem:[#allocation2] sm:$0xff] (%p591_p3), %v597_v0   ;;  %v603_v3 = vld [vmem:[#allocation6 + $0x18] sm:$0xff] (%p591_p3)   ;;  %v605_v4 = vld [vmem:[#allocation6 + $0x20] sm:$0xff] (%p591_p3)   ;;  %v607_v5 = vld [vmem:[#allocation6 + $0x28] sm:$0xff] (%p591_p3)  }
  0x41   : > { %596 = sbr.rel (!%p591_p3) target bundleno = 72 (0x48), region = 92  ;;  %615 = vst [vmem:[#allocation2 + $0x8] sm:$0xff] (%p591_p3), %v599_v1   ;;  %v609_v6 = vld [vmem:[#allocation6 + $0x30] sm:$0xff] (%p591_p3)   ;;  %v611_v7 = vld [vmem:[#allocation6 + $0x38] sm:$0xff] (%p591_p3)  }
  0x42   : > { %s584_s30 = scalar_lea.vmem %s3190_s7, %s2984_s17  ;;  %s587_s2 = scalar_lea.vmem %s3192_s9, %s2984_s17  ;;  %617 = vst [vmem:[#allocation2 + $0x10] sm:$0xff] (%p591_p3), %v601_v2  }
  0x43   : > { %s590_s27 = scalar_lea.vmem %s3193_s10, %s2984_s17  ;;  %619 = vst [vmem:[#allocation2 + $0x18] sm:$0xff] (%p591_p3), %v603_v3  }
  0x44   : > { %621 = vst [vmem:[#allocation2 + $0x20] sm:$0xff] (%p591_p3), %v605_v4  }
  0x45   : > { %623 = vst [vmem:[#allocation2 + $0x28] sm:$0xff] (%p591_p3), %v607_v5  }
  0x46   : > { %625 = vst [vmem:[#allocation2 + $0x30] sm:$0xff] %v609_v6  }
  0x47   : > { %627 = vst [vmem:[#allocation2 + $0x38] sm:$0xff] %v611_v7  }
  0x48 PF: > { %v2191_v8 = vld [vmem:[%s2975_s12 + $0x38] sm:$0xff]  ;;  %v2190_v9 = vld [vmem:[%s2975_s12 + $0x30] sm:$0xff]  ;;  %v2189_v10 = vld [vmem:[%s2975_s12 + $0x28] sm:$0xff]  ;;  %s1452_s18 = sld [smem:[#allocation5]]  ;;  %p1667_p1 = scmp.eq.s32.totalorder %s2725_s22, 2 }
  0x49   : > { %2279 = vmatpush.bf16.msra.mxu1 %v2191_v8  ;;  %776 = vmatpush.bf16.msra.mxu0 %v2191_v8  ;;  %v2188_v11 = vld [vmem:[%s2975_s12 + $0x20] sm:$0xff]  ;;  %v2187_v12 = vld [vmem:[%s2975_s12 + $0x18] sm:$0xff]  ;;  %v2186_v13 = vld [vmem:[%s2975_s12 + $0x10] sm:$0xff]  ;;  %p2167_p4 = scmp.ne.s32.totalorder %s2725_s22, 2 }
  0x4a   : > { %2280 = vmatpush.bf16.msra.mxu2 %v2191_v8  ;;  %2281 = vmatpush.bf16.msra.mxu3 %v2191_v8  ;;  %v2185_v14 = vld [vmem:[%s2975_s12 + $0x8] sm:$0xff]  ;;  %v2184_v15 = vld [vmem:[%s2975_s12] sm:$0xff]  ;;  %v2178_v17 = vld [vmem:[#allocation12 + $0x10] sm:$0xff]  ;;  %s1668_s13 = scalar_select %p1667_p1, -3e+38, 0.0 }
  0x4b   : > { %v2176_v18 = vld [vmem:[#allocation12] sm:$0xff]  ;;  %v2179_v23 = vld [vmem:[#allocation12 + $0x18] sm:$0xff]  ;;  %v2177_v24 = vld [vmem:[#allocation12 + $0x8] sm:$0xff] }
  0x4c   : > { %v2203_v22 = vld [vmem:[#allocation2 + $0x18] sm:$0xff]  ;;  %v2202_v25 = vld [vmem:[#allocation2 + $0x10] sm:$0xff]  ;;  %v2201_v26 = vld [vmem:[#allocation2 + $0x8] sm:$0xff] }
  0x4d   : > { %2282 = vmatpush.bf16.msra.mxu1 %v2190_v9  ;;  %777 = vmatpush.bf16.msra.mxu0 %v2190_v9  ;;  %v2204_v21 = vld [vmem:[#allocation2 + $0x20] sm:$0xff]  ;;  %v2193_v29 = vld [vmem:[#allocation9 + $0x8] sm:$0xff]  ;;  %v2194_v31 = vld [vmem:[#allocation9 + $0x10] sm:$0xff] }
  0x4e   : > { %2283 = vmatpush.bf16.msra.mxu2 %v2190_v9  ;;  %2284 = vmatpush.bf16.msra.mxu3 %v2190_v9  ;;  %v2207_v16 = vld [vmem:[#allocation2 + $0x38] sm:$0xff]  ;;  %v2205_v20 = vld [vmem:[#allocation2 + $0x28] sm:$0xff]  ;;  %v2200_v27 = vld [vmem:[#allocation2] sm:$0xff]  ;;  %s1453_s5 = scvt.s32.f32 %s1452_s18 }
  0x4f   : > { %v2206_v19 = vld [vmem:[#allocation2 + $0x30] sm:$0xff]  ;;  %v2192_v28 = vld [vmem:[#allocation9] sm:$0xff]  ;;  %v2181_v32 = vld [vmem:[#allocation12 + $0x28] sm:$0xff] }
  0x50   : > { %v2180_v30 = vld [vmem:[#allocation12 + $0x20] sm:$0xff]  ;;  %v2195_v33 = vld [vmem:[#allocation9 + $0x18] sm:$0xff]  ;;  %v2182_v34 = vld [vmem:[#allocation12 + $0x30] sm:$0xff] }
  0x51   : > { %2285 = vmatpush.bf16.msra.mxu1 %v2189_v10  ;;  %778 = vmatpush.bf16.msra.mxu0 %v2189_v10  ;;  %v2196_v35 = vld [vmem:[#allocation9 + $0x20] sm:$0xff]  ;;  %v2183_v36 = vld [vmem:[#allocation12 + $0x38] sm:$0xff]  ;;  %v2197_v37 = vld [vmem:[#allocation9 + $0x28] sm:$0xff] }
  0x52   : > { %2286 = vmatpush.bf16.msra.mxu2 %v2189_v10  ;;  %2287 = vmatpush.bf16.msra.mxu3 %v2189_v10  ;;  %v2198_v38 = vld [vmem:[#allocation9 + $0x30] sm:$0xff]  ;;  %v2199_v41 = vld [vmem:[#allocation9 + $0x38] sm:$0xff] }
  0x55   : > { %2288 = vmatpush.bf16.msra.mxu1 %v2188_v11  ;;  %779 = vmatpush.bf16.msra.mxu0 %v2188_v11 }
  0x56   : > { %2289 = vmatpush.bf16.msra.mxu2 %v2188_v11  ;;  %2290 = vmatpush.bf16.msra.mxu3 %v2188_v11 }
  0x59   : > { %2291 = vmatpush.bf16.msra.mxu1 %v2187_v12  ;;  %780 = vmatpush.bf16.msra.mxu0 %v2187_v12 }
  0x5a   : > { %2292 = vmatpush.bf16.msra.mxu2 %v2187_v12  ;;  %2293 = vmatpush.bf16.msra.mxu3 %v2187_v12 }
  0x5d   : > { %2294 = vmatpush.bf16.msra.mxu1 %v2186_v13  ;;  %781 = vmatpush.bf16.msra.mxu0 %v2186_v13 }
  0x5e   : > { %2295 = vmatpush.bf16.msra.mxu2 %v2186_v13  ;;  %2296 = vmatpush.bf16.msra.mxu3 %v2186_v13 }
  0x61   : > { %2297 = vmatpush.bf16.msra.mxu1 %v2185_v14  ;;  %782 = vmatpush.bf16.msra.mxu0 %v2185_v14 }
  0x62   : > { %2298 = vmatpush.bf16.msra.mxu2 %v2185_v14  ;;  %2299 = vmatpush.bf16.msra.mxu3 %v2185_v14 }
  0x65   : > { %2300 = vmatpush.bf16.msra.mxu1 %v2184_v15  ;;  %783 = vmatpush.bf16.msra.mxu0 %v2184_v15 }
  0x66   : > { %2301 = vmatpush.bf16.msra.mxu2 %v2184_v15  ;;  %2302 = vmatpush.bf16.msra.mxu3 %v2184_v15 }
  0x68   : > { %794 = vmatmul.bf16.vlgmr.msra.gmra.mxu1 %v2178_v17  ;;  %784 = vmatmul.bf16.vlgmr.msra.gmra.mxu0 %v2176_v18 }
  0x69   : > { %953 = vmatpush.bf16.msrb.mxu1 %v2207_v16  ;;  %804 = vmatmul.bf16.vlgmr.msra.gmra.mxu2 %v2180_v30 }
  0x6a   : > { %814 = vmatmul.bf16.vlgmr.msra.gmra.mxu3 %v2182_v34  ;;  %v2210_v34 = vld [vmem:[#allocation11 + $0x10] sm:$0xff] }
  0x6d   : > { %954 = vmatpush.bf16.msrb.mxu1 %v2206_v19 }
  0x71   : > { %955 = vmatpush.bf16.msrb.mxu1 %v2205_v20 }
  0x75   : > { %956 = vmatpush.bf16.msrb.mxu1 %v2204_v21 }
  0x78   : > { %799 = vmatmul.bf16.gmra.mxu1 %v2179_v23  ;;  %789 = vmatmul.bf16.gmra.mxu0 %v2177_v24 }
  0x79   : > { %957 = vmatpush.bf16.msrb.mxu1 %v2203_v22  ;;  %809 = vmatmul.bf16.gmra.mxu2 %v2181_v32  ;;  %v2208_v32 = vld [vmem:[#allocation11] sm:$0xff] }
  0x7a   : > { %819 = vmatmul.bf16.gmra.mxu3 %v2183_v36  ;;  %v2212_v36 = vld [vmem:[#allocation11 + $0x20] sm:$0xff] }
  0x7d   : > { %958 = vmatpush.bf16.msrb.mxu1 %v2202_v25 }
  0x81   : > { %959 = vmatpush.bf16.msrb.mxu1 %v2201_v26 }
  0x85   : > { %960 = vmatpush.bf16.msrb.mxu1 %v2200_v27 }
  0x88   : > { %961 = vmatmul.bf16.vlgmr.msrb.gmra.mxu1 %v2192_v28 }
  0x98   : > { %966 = vmatmul.bf16.gmra.mxu1 %v2193_v29 }
  0xa8   : > { %971 = vmatmul.bf16.gmra.mxu1 %v2194_v31 }
  0xb8   : > { %976 = vmatmul.bf16.gmra.mxu1 %v2195_v33  ;;  %v2209_v33 = vld [vmem:[#allocation11 + $0x8] sm:$0xff] }
  0xc8   : > { %981 = vmatmul.bf16.gmra.mxu1 %v2196_v35  ;;  %v2211_v35 = vld [vmem:[#allocation11 + $0x18] sm:$0xff] }
  0xd8   : > { %986 = vmatmul.bf16.gmra.mxu1 %v2197_v37  ;;  %v2223_v37 = vld [vmem:[%s2998_s11 + $0x38] sm:$0xff] }
  0xd9   : > { %1266 = vmatpush.bf16.msrb.mxu3 %v2223_v37 }
  0xe5   : > { %v795_v39 = vpop.f32.mrf.mxu1  ;;  %v785_v44 = vpop.f32.mrf.mxu0 }
  0xe8   : > { %991 = vmatmul.bf16.gmra.mxu1 %v2198_v38  ;;  %v2213_v38 = vld [vmem:[#allocation11 + $0x28] sm:$0xff] }
  0xec   : > { %v805_v9 = vpop.f32.mrf.mxu2 }
  0xed   : > { %v797_v40 = vpop.f32.mrf.mxu1  ;;  %v787_v46 = vpop.f32.mrf.mxu0 }
  0xee   : > { %v815_v8 = vpop.f32.mrf.mxu3 }
  0xf4   : > { %v807_v12 = vpop.f32.mrf.mxu2 }
  0xf5   : > { %v800_v42 = vpop.f32.mrf.mxu1  ;;  %v790_v51 = vpop.f32.mrf.mxu0 }
  0xf6   : > { %v817_v11 = vpop.f32.mrf.mxu3 }
  0xf8   : > { %996 = vmatmul.bf16.gmra.mxu1 %v2199_v41  ;;  %v2220_v41 = vld [vmem:[%s2998_s11 + $0x20] sm:$0xff] }
  0xfc   : > { %v810_v16 = vpop.f32.mrf.mxu2 }
  0xfd   : > { %v802_v43 = vpop.f32.mrf.mxu1  ;;  %v792_v53 = vpop.f32.mrf.mxu0 }
  0xfe   : > { %v820_v14 = vpop.f32.mrf.mxu3 }
 0x104   : > { %v812_v23 = vpop.f32.mrf.mxu2 }
 0x105   : > { %v962_v45 = vpop.f32.mrf.mxu1 }
 0x106   : > { %v963_v48 = vadd.f32 %v962_v45, %v785_v44  ;;  %v822_v17 = vpop.f32.mrf.mxu3  ;;  %v2218_v44 = vld [vmem:[%s2998_s11 + $0x10] sm:$0xff]  ;;  %v2217_v45 = vld [vmem:[%s2998_s11 + $0x8] sm:$0xff] }
 0x10d   : > { %v964_v47 = vpop.f32.mrf.mxu1 }
 0x10e   : > { %v965_v49 = vadd.f32 %v964_v47, %v787_v46  ;;  %v2216_v46 = vld [vmem:[%s2998_s11] sm:$0xff]  ;;  %v2215_v47 = vld [vmem:[#allocation11 + $0x38] sm:$0xff] }
 0x110   : > { %v1034_v50 = vpack.c.bf16 %v965_v49, %v963_v48 }
 0x115   : > { %v967_v52 = vpop.f32.mrf.mxu1 }
 0x116   : > { %v968_v55 = vadd.f32 %v967_v52, %v790_v51 }
 0x11d   : > { %v969_v54 = vpop.f32.mrf.mxu1 }
 0x11e   : > { %v970_v56 = vadd.f32 %v969_v54, %v792_v53 }
 0x120   : > { %v1035_v57 = vpack.c.bf16 %v970_v56, %v968_v55 }
 0x125   : > { %v972_v58 = vpop.f32.mrf.mxu1 }
 0x126   : > { %v973_v59 = vadd.f32 %v972_v58, %v795_v39  ;;  %v2222_v39 = vld [vmem:[%s2998_s11 + $0x30] sm:$0xff] }
 0x127   : > { %1267 = vmatpush.bf16.msrb.mxu3 %v2222_v39 }
 0x12d   : > { %v974_v60 = vpop.f32.mrf.mxu1 }
 0x12e   : > { %v975_v61 = vadd.f32 %v974_v60, %v797_v40  ;;  %v2221_v40 = vld [vmem:[%s2998_s11 + $0x28] sm:$0xff] }
 0x12f   : > { %1268 = vmatpush.bf16.msrb.mxu3 %v2221_v40 }
 0x130   : > { %v1036_v62 = vpack.c.bf16 %v975_v61, %v973_v59 }
 0x133   : > { %1269 = vmatpush.bf16.msrb.mxu3 %v2220_v41 }
 0x135   : > { %v977_v63 = vpop.f32.mrf.mxu1 }
 0x136   : > { %v978_v0 = vadd.f32 %v977_v63, %v800_v42  ;;  %v2219_v42 = vld [vmem:[%s2998_s11 + $0x18] sm:$0xff] }
 0x137   : > { %1270 = vmatpush.bf16.msrb.mxu3 %v2219_v42 }
 0x13b   : > { %1271 = vmatpush.bf16.msrb.mxu3 %v2218_v44 }
 0x13d   : > { %v979_v1 = vpop.f32.mrf.mxu1 }
 0x13e   : > { %v980_v2 = vadd.f32 %v979_v1, %v802_v43  ;;  %v2214_v43 = vld [vmem:[#allocation11 + $0x30] sm:$0xff] }
 0x13f   : > { %1272 = vmatpush.bf16.msrb.mxu3 %v2217_v45 }
 0x140   : > { %v1037_v3 = vpack.c.bf16 %v980_v2, %v978_v0  ;;  %v2231_v2 = vld [vmem:[%s3000_s21 + $0x38] sm:$0xff] }
 0x141   : > { %1403 = vmatpush.bf16.msrb.mxu0 %v2231_v2 }
 0x143   : > { %1273 = vmatpush.bf16.msrb.mxu3 %v2216_v46 }
 0x145   : > { %v982_v4 = vpop.f32.mrf.mxu1 }
 0x146   : > { %v983_v30 = vadd.f32 %v982_v4, %v805_v9  ;;  %v2227_v9 = vld [vmem:[%s3000_s21 + $0x18] sm:$0xff] }
 0x14d   : > { %v984_v5 = vpop.f32.mrf.mxu1 }
 0x14e   : > { %v985_v28 = vadd.f32 %v984_v5, %v807_v12  ;;  %v2229_v5 = vld [vmem:[%s3000_s21 + $0x28] sm:$0xff] }
 0x14f   : > { %v2225_v12 = vld [vmem:[%s3000_s21 + $0x8] sm:$0xff] }
 0x150   : > { %v1038_v31 = vpack.c.bf16 %v985_v28, %v983_v30 }
 0x155   : > { %v987_v6 = vpop.f32.mrf.mxu1 }
 0x156   : > { %v988_v27 = vadd.f32 %v987_v6, %v810_v16  ;;  %v2228_v6 = vld [vmem:[%s3000_s21 + $0x20] sm:$0xff] }
 0x15d   : > { %v989_v7 = vpop.f32.mrf.mxu1 }
 0x15e   : > { %v990_v25 = vadd.f32 %v989_v7, %v812_v23 }
 0x160   : > { %v1039_v29 = vpack.c.bf16 %v990_v25, %v988_v27 }
 0x165   : > { %v992_v10 = vpop.f32.mrf.mxu1 }
 0x166   : > { %v993_v24 = vadd.f32 %v992_v10, %v815_v8 }
 0x16d   : > { %v994_v13 = vpop.f32.mrf.mxu1 }
 0x16e   : > { %v995_v21 = vadd.f32 %v994_v13, %v817_v11  ;;  %v2226_v11 = vld [vmem:[%s3000_s21 + $0x10] sm:$0xff] }
 0x170   : > { %v1040_v26 = vpack.c.bf16 %v995_v21, %v993_v24 }
 0x175   : > { %v997_v15 = vpop.f32.mrf.mxu1 }
 0x176   : > { %v998_v19 = vadd.f32 %v997_v15, %v820_v14  ;;  %v2224_v14 = vld [vmem:[%s3000_s21] sm:$0xff] }
 0x17d   : > { %v999_v18 = vpop.f32.mrf.mxu1 }
 0x17e   : > { %v1000_v20 = vadd.f32 %v999_v18, %v822_v17  ;;  %v2422_v17 = vld [vmem:[%s584_s30] ss:$0 sm:$0xff] }
 0x180   : > { %v1041_v22 = vpack.c.bf16 %v1000_v20, %v998_v19 }
 0x182   : > { %1090 = vmatpush.bf16.msrb.mxu2 %v1041_v22 }
 0x186   : > { %1091 = vmatpush.bf16.msrb.mxu2 %v1040_v26 }
 0x18a   : > { %1092 = vmatpush.bf16.msrb.mxu2 %v1039_v29 }
 0x18e   : > { %1093 = vmatpush.bf16.msrb.mxu2 %v1038_v31 }
 0x192   : > { %1094 = vmatpush.bf16.msrb.mxu2 %v1037_v3  ;;  %v2230_v3 = vld [vmem:[%s3000_s21 + $0x30] sm:$0xff] }
 0x193   : > { %1404 = vmatpush.bf16.msrb.mxu0 %v2230_v3 }
 0x196   : > { %1095 = vmatpush.bf16.msrb.mxu2 %v1036_v62 }
 0x197   : > { %1405 = vmatpush.bf16.msrb.mxu0 %v2229_v5 }
 0x19a   : > { %1096 = vmatpush.bf16.msrb.mxu2 %v1035_v57 }
 0x19b   : > { %1406 = vmatpush.bf16.msrb.mxu0 %v2228_v6 }
 0x19e   : > { %1097 = vmatpush.bf16.msrb.mxu2 %v1034_v50 }
 0x19f   : > { %1407 = vmatpush.bf16.msrb.mxu0 %v2227_v9 }
 0x1a1   : > { %1098 = vmatmul.bf16.vlgmr.msrb.gmra.mxu2 %v2208_v32 }
 0x1a3   : > { %1408 = vmatpush.bf16.msrb.mxu0 %v2226_v11 }
 0x1a7   : > { %1409 = vmatpush.bf16.msrb.mxu0 %v2225_v12 }
 0x1ab   : > { %1410 = vmatpush.bf16.msrb.mxu0 %v2224_v14  ;;  %v1454_v14 = vstv %s1453_s5 }
 0x1ac   : > { %2425 = vrcp.f32 %v1454_v14  ;;  %vm1460_vm0 = vweird.f32 %v1454_v14 }
 0x1b1   : > { %1103 = vmatmul.bf16.gmra.mxu2 %v2209_v33 }
 0x1c1   : > { %1108 = vmatmul.bf16.gmra.mxu2 %v2210_v34 }
 0x1d1   : > { %1113 = vmatmul.bf16.gmra.mxu2 %v2211_v35 }
 0x1e1   : > { %1118 = vmatmul.bf16.gmra.mxu2 %v2212_v36 }
 0x1f1   : > { %1123 = vmatmul.bf16.gmra.mxu2 %v2213_v38 }
 0x201   : > { %1128 = vmatmul.bf16.gmra.mxu2 %v2214_v43 }
 0x211   : > { %1133 = vmatmul.bf16.gmra.mxu2 %v2215_v47 }
 0x224   : > { %v1099_v48 = vpop.f32.mrf.mxu2 }
 0x22c   : > { %v1101_v49 = vpop.f32.mrf.mxu2 }
 0x22d   : > { %v1190_v50 = vpack.c.bf16 %v1101_v49, %v1099_v48 }
 0x22f   : > { %1274 = vmatmul.bf16.vlgmr.msrb.gmra.mxu3 %v1190_v50 }
 0x234   : > { %v1104_v51 = vpop.f32.mrf.mxu2 }
 0x23c   : > { %v1106_v52 = vpop.f32.mrf.mxu2 }
 0x23d   : > { %v1191_v53 = vpack.c.bf16 %v1106_v52, %v1104_v51 }
 0x23f   : > { %1279 = vmatmul.bf16.gmra.mxu3 %v1191_v53 }
 0x244   : > { %v1109_v54 = vpop.f32.mrf.mxu2 }
 0x24c   : > { %v1111_v55 = vpop.f32.mrf.mxu2 }
 0x24d   : > { %v1192_v56 = vpack.c.bf16 %v1111_v55, %v1109_v54 }
 0x24f   : > { %1284 = vmatmul.bf16.gmra.mxu3 %v1192_v56 }
 0x254   : > { %v1114_v57 = vpop.f32.mrf.mxu2 }
 0x25c   : > { %v1116_v58 = vpop.f32.mrf.mxu2 }
 0x25d   : > { %v1193_v59 = vpack.c.bf16 %v1116_v58, %v1114_v57 }
 0x25f   : > { %1289 = vmatmul.bf16.gmra.mxu3 %v1193_v59 }
 0x264   : > { %v1119_v60 = vpop.f32.mrf.mxu2 }
 0x26c   : > { %v1121_v61 = vpop.f32.mrf.mxu2 }
 0x26d   : > { %v1194_v62 = vpack.c.bf16 %v1121_v61, %v1119_v60 }
 0x26f   : > { %1294 = vmatmul.bf16.gmra.mxu3 %v1194_v62 }
 0x274   : > { %v1124_v63 = vpop.f32.mrf.mxu2 }
 0x27c   : > { %v1126_v0 = vpop.f32.mrf.mxu2 }
 0x27d   : > { %v1195_v1 = vpack.c.bf16 %v1126_v0, %v1124_v63 }
 0x27f   : > { %1299 = vmatmul.bf16.gmra.mxu3 %v1195_v1 }
 0x284   : > { %v1129_v4 = vpop.f32.mrf.mxu2 }
 0x28c   : > { %v1131_v7 = vpop.f32.mrf.mxu2 }
 0x28d   : > { %v1196_v8 = vpack.c.bf16 %v1131_v7, %v1129_v4 }
 0x28f   : > { %1304 = vmatmul.bf16.gmra.mxu3 %v1196_v8 }
 0x294   : > { %v1134_v10 = vpop.f32.mrf.mxu2 }
 0x29c   : > { %v1136_v13 = vpop.f32.mrf.mxu2 }
 0x29d   : > { %v1197_v15 = vpack.c.bf16 %v1136_v13, %v1134_v10 }
 0x29f   : > { %1309 = vmatmul.bf16.gmra.mxu3 %v1197_v15 }
 0x2b2   : > { %v1275_v16 = vpop.f32.mrf.mxu3 }
 0x2b3   : > { %v1276_v18 = vadd.f32 %v2422_v17, %v1275_v16  ;;  %v2426_v16 = vpop.eup %2425 }
 0x2b4   : > { %vm1461_vm1 = vweird.f32 %v2426_v16 }
 0x2b5   : > { %v1315_v21 = vmax.f32 %v1276_v18, 0.0  ;;  %vm1462_vm2 = vmor %vm1460_vm0, %vm1461_vm1 }
 0x2ba   : > { %v1277_v19 = vpop.f32.mrf.mxu3 }
 0x2bb   : > { %v1278_v20 = vadd.f32 %v2422_v17, %v1277_v19 }
 0x2bd   : > { %v1316_v22 = vmax.f32 %v1278_v20, 0.0 }
 0x2bf   : > { %v1331_v23 = vpack.c.bf16 %v1316_v22, %v1315_v21  ;;  %v1466_v21 = vand.u32 2147483648, %v1454_v14 }
 0x2c1   : > { %1411 = vmatmul.bf16.vlgmr.msrb.gmra.mxu0 %v1331_v23  ;;  %v1464_v23 = vand.u32 2147483647, %v1454_v14 }
 0x2c2   : > { %v1280_v24 = vpop.f32.mrf.mxu3 }
 0x2c3   : > { %v1281_v25 = vadd.f32 %v2422_v17, %v1280_v24  ;;  %v1467_v24 = vor.u32 1.1754944e-38, %v1466_v21  ;;  %vm1465_vm3 = vcmp.eq.f32.partialorder %v1464_v23, 8.507059e+37 }
 0x2c5   : > { %v1317_v28 = vmax.f32 %v1281_v25, 0.0 }
 0x2ca   : > { %v1282_v26 = vpop.f32.mrf.mxu3 }
 0x2cb   : > { %v1283_v27 = vadd.f32 %v2422_v17, %v1282_v26 }
 0x2cd   : > { %v1318_v29 = vmax.f32 %v1283_v27, 0.0 }
 0x2cf   : > { %v1332_v30 = vpack.c.bf16 %v1318_v29, %v1317_v28 }
 0x2d1   : > { %1416 = vmatmul.bf16.gmra.mxu0 %v1332_v30  ;;  %v1470_v30 = vlaneseq }
 0x2d2   : > { %v1285_v31 = vpop.f32.mrf.mxu3 }
 0x2d3   : > { %v1286_v32 = vadd.f32 %v2422_v17, %v1285_v31  ;;  %v3051_v31 = vshrl.u32 %v1470_v30, 7 }
 0x2d5   : > { %v1319_v35 = vmax.f32 %v1286_v32, 0.0 }
 0x2da   : > { %v1287_v33 = vpop.f32.mrf.mxu3 }
 0x2db   : > { %v1288_v34 = vadd.f32 %v2422_v17, %v1287_v33  ;;  %v1472_v33 = vadd.s32 8, %v3051_v31 }
 0x2dd   : > { %v1320_v36 = vmax.f32 %v1288_v34, 0.0  ;;  %v1473_v34 = vadd.s32 16, %v3051_v31 }
 0x2df   : > { %v1333_v37 = vpack.c.bf16 %v1320_v36, %v1319_v35  ;;  %v3057_v35 = vstv %s1452_s18  ;;  %v1474_v36 = vadd.s32 24, %v3051_v31 }
 0x2e0   : > { %vm1489_vm4 = vcmp.lt.s32.totalorder %v1472_v33, %v3057_v35  ;;  %vm1488_vm5 = vcmp.lt.s32.totalorder %v3051_v31, %v3057_v35  ;;  %vm1490_vm6 = vcmp.lt.s32.totalorder %v1473_v34, %v3057_v35  ;;  %v1485_v34 = vadd.s32 112, %v3051_v31 }
 0x2e1   : > { %1421 = vmatmul.bf16.gmra.mxu0 %v1333_v37  ;;  %v1475_v37 = vadd.s32 32, %v3051_v31  ;;  %vm1491_vm7 = vcmp.lt.s32.totalorder %v1474_v36, %v3057_v35 }
 0x2e2   : > { %v1290_v38 = vpop.f32.mrf.mxu3 }
 0x2e3   : > { %v1291_v39 = vadd.f32 %v2422_v17, %v1290_v38  ;;  %vm1492_vm8 = vcmp.lt.s32.totalorder %v1475_v37, %v3057_v35 }
 0x2e5   : > { %v1321_v42 = vmax.f32 %v1291_v39, 0.0 }
 0x2ea   : > { %v1292_v40 = vpop.f32.mrf.mxu3 }
 0x2eb   : > { %v1293_v41 = vadd.f32 %v2422_v17, %v1292_v40  ;;  %v1476_v40 = vadd.s32 40, %v3051_v31 }
 0x2ed   : > { %v1322_v43 = vmax.f32 %v1293_v41, 0.0  ;;  %vm1493_vm9 = vcmp.lt.s32.totalorder %v1476_v40, %v3057_v35 }
 0x2ef   : > { %v1334_v44 = vpack.c.bf16 %v1322_v43, %v1321_v42 }
 0x2f1   : > { %1426 = vmatmul.bf16.gmra.mxu0 %v1334_v44  ;;  %v1477_v44 = vadd.s32 48, %v3051_v31 }
 0x2f2   : > { %v1295_v45 = vpop.f32.mrf.mxu3 }
 0x2f3   : > { %v1296_v46 = vadd.f32 %v2422_v17, %v1295_v45  ;;  %vm1494_vm10 = vcmp.lt.s32.totalorder %v1477_v44, %v3057_v35 }
 0x2f5   : > { %v1323_v49 = vmax.f32 %v1296_v46, 0.0 }
 0x2fa   : > { %v1297_v47 = vpop.f32.mrf.mxu3 }
 0x2fb   : > { %v1298_v48 = vadd.f32 %v2422_v17, %v1297_v47 }
 0x2fd   : > { %v1324_v50 = vmax.f32 %v1298_v48, 0.0  ;;  %v1478_v48 = vadd.s32 56, %v3051_v31 }
 0x2ff   : > { %v1335_v51 = vpack.c.bf16 %v1324_v50, %v1323_v49  ;;  %vm1495_vm11 = vcmp.lt.s32.totalorder %v1478_v48, %v3057_v35 }
 0x301   : > { %1431 = vmatmul.bf16.gmra.mxu0 %v1335_v51 }
 0x302   : > { %v1300_v52 = vpop.f32.mrf.mxu3 }
 0x303   : > { %v1301_v53 = vadd.f32 %v2422_v17, %v1300_v52 }
 0x305   : > { %v1325_v56 = vmax.f32 %v1301_v53, 0.0 }
 0x30a   : > { %v1302_v54 = vpop.f32.mrf.mxu3 }
 0x30b   : > { %v1303_v55 = vadd.f32 %v2422_v17, %v1302_v54 }
 0x30d   : > { %v1326_v57 = vmax.f32 %v1303_v55, 0.0  ;;  %v1479_v55 = vadd.s32 64, %v3051_v31 }
 0x30f   : > { %v1336_v58 = vpack.c.bf16 %v1326_v57, %v1325_v56  ;;  %vm1496_vm12 = vcmp.lt.s32.totalorder %v1479_v55, %v3057_v35 }
 0x311   : > { %1436 = vmatmul.bf16.gmra.mxu0 %v1336_v58 }
 0x312   : > { %v1305_v59 = vpop.f32.mrf.mxu3 }
 0x313   : > { %v1306_v60 = vadd.f32 %v2422_v17, %v1305_v59 }
 0x315   : > { %v1327_v63 = vmax.f32 %v1306_v60, 0.0 }
 0x31a   : > { %v1307_v61 = vpop.f32.mrf.mxu3 }
 0x31b   : > { %v1308_v62 = vadd.f32 %v2422_v17, %v1307_v61  ;;  %v1480_v61 = vadd.s32 72, %v3051_v31 }
 0x31d   : > { %v1328_v0 = vmax.f32 %v1308_v62, 0.0  ;;  %vm1497_vm13 = vcmp.lt.s32.totalorder %v1480_v61, %v3057_v35 }
 0x31f   : > { %v1337_v1 = vpack.c.bf16 %v1328_v0, %v1327_v63 }
 0x321   : > { %1441 = vmatmul.bf16.gmra.mxu0 %v1337_v1 }
 0x322   : > { %v1310_v2 = vpop.f32.mrf.mxu3 }
 0x323   : > { %v1311_v3 = vadd.f32 %v2422_v17, %v1310_v2  ;;  %v1481_v2 = vadd.s32 80, %v3051_v31 }
 0x325   : > { %v1329_v6 = vmax.f32 %v1311_v3, 0.0  ;;  %vm1498_vm14 = vcmp.lt.s32.totalorder %v1481_v2, %v3057_v35 }
 0x32a   : > { %v1312_v4 = vpop.f32.mrf.mxu3 }
 0x32b   : > { %v1313_v5 = vadd.f32 %v2422_v17, %v1312_v4  ;;  %v1456_v17 = vmul.f32 %v2426_v16, %v1454_v14 }
 0x32d   : > { %v1330_v7 = vmax.f32 %v1313_v5, 0.0  ;;  %v1457_v18 = vsub.f32 1.0, %v1456_v17  ;;  %v1483_v17 = vadd.s32 96, %v3051_v31 }
 0x32f   : > { %v1338_v8 = vpack.c.bf16 %v1330_v7, %v1329_v6  ;;  %v1458_v19 = vmul.f32 %v2426_v16, %v1457_v18  ;;  %v1482_v6 = vadd.s32 88, %v3051_v31  ;;  %vm1500_vm0 = vcmp.lt.s32.totalorder %v1483_v17, %v3057_v35 }
 0x331   : > { %1446 = vmatmul.bf16.gmra.mxu0 %v1338_v8  ;;  %v1459_v22 = vadd.f32 %v2426_v16, %v1458_v19  ;;  %vm1499_vm15 = vcmp.lt.s32.totalorder %v1482_v6, %v3057_v35 }
 0x333   : > { %v1463_v25 = vsel %vm1462_vm2, %v2426_v16, %v1459_v22  ;;  %vm1502_vm2 = vcmp.lt.s32.totalorder %v1485_v34, %v3057_v35 }
 0x334   : > { %v1468_v26 = vsel %vm1465_vm3, %v1467_v24, %v1463_v25  ;;  %v1484_v24 = vadd.s32 104, %v3051_v31 }
 0x335   : > { %2303 = vpush %v1468_v26 }
 0x336   : > { %vm1501_vm1 = vcmp.lt.s32.totalorder %v1484_v24, %v3057_v35 }
 0x33e   : > { %v3031_v9 = vpop.f32.mrf.mxu0 }
 0x33f   : > { %v1504_v41 = vsel %vm1488_vm5, %v3031_v9, 0.0 }
 0x340   : > { %v1543_v46 = vmul.f32 %v1504_v41, %v1504_v41 }
 0x346   : > { %v3033_v10 = vpop.f32.mrf.mxu0 }
 0x347   : > { %v1505_v38 = vsel %vm1489_vm4, %v3033_v10, 0.0 }
 0x348   : > { %v1544_v43 = vmul.f32 %v1505_v38, %v1505_v38  ;;  %v1520_v49 = vadd.f32 %v1505_v38, %v1504_v41 }
 0x34a   : > { %v1559_v51 = vadd.f32 %v1544_v43, %v1543_v46 }
 0x34e   : > { %v3035_v11 = vpop.f32.mrf.mxu0 }
 0x34f   : > { %v1506_v42 = vsel %vm1490_vm6, %v3035_v11, 0.0 }
 0x350   : > { %v1545_v47 = vmul.f32 %v1506_v42, %v1506_v42  ;;  %v1521_v53 = vadd.f32 %v1520_v49, %v1506_v42 }
 0x352   : > { %v1560_v57 = vadd.f32 %v1559_v51, %v1545_v47 }
 0x356   : > { %v3037_v12 = vpop.f32.mrf.mxu0 }
 0x357   : > { %v1507_v45 = vsel %vm1491_vm7, %v3037_v12, 0.0 }
 0x358   : > { %v1546_v52 = vmul.f32 %v1507_v45, %v1507_v45  ;;  %v1522_v59 = vadd.f32 %v1521_v53, %v1507_v45 }
 0x35a   : > { %v1561_v62 = vadd.f32 %v1560_v57, %v1546_v52 }
 0x35e   : > { %v3039_v13 = vpop.f32.mrf.mxu0 }
 0x35f   : > { %v1508_v50 = vsel %vm1492_vm8, %v3039_v13, 0.0 }
 0x360   : > { %v1547_v58 = vmul.f32 %v1508_v50, %v1508_v50  ;;  %v1523_v0 = vadd.f32 %v1522_v59, %v1508_v50  ;;  %v1486_v50 = vadd.s32 120, %v3051_v31 }
 0x362   : > { %v1562_v3 = vadd.f32 %v1561_v62, %v1547_v58  ;;  %vm1503_vm3 = vcmp.lt.s32.totalorder %v1486_v50, %v3057_v35 }
 0x366   : > { %v3041_v15 = vpop.f32.mrf.mxu0  ;;  %s2304_s29 = spop %2303 }
 0x367   : > { %v1509_v54 = vsel %vm1493_vm9, %v3041_v15, 0.0 }
 0x368   : > { %v1548_v63 = vmul.f32 %v1509_v54, %v1509_v54  ;;  %v1524_v5 = vadd.f32 %v1523_v0, %v1509_v54 }
 0x36a   : > { %v1563_v7 = vadd.f32 %v1562_v3, %v1548_v63 }
 0x36e   : > { %v3043_v20 = vpop.f32.mrf.mxu0 }
 0x36f   : > { %v1510_v60 = vsel %vm1494_vm10, %v3043_v20, 0.0 }
 0x370   : > { %v1549_v4 = vmul.f32 %v1510_v60, %v1510_v60  ;;  %v1525_v16 = vadd.f32 %v1524_v5, %v1510_v60 }
 0x372   : > { %v1564_v19 = vadd.f32 %v1563_v7, %v1549_v4 }
 0x376   : > { %v3045_v27 = vpop.f32.mrf.mxu0 }
 0x377   : > { %v1511_v1 = vsel %vm1495_vm11, %v3045_v27, 0.0 }
 0x378   : > { %v1550_v8 = vmul.f32 %v1511_v1, %v1511_v1  ;;  %v1526_v22 = vadd.f32 %v1525_v16, %v1511_v1  ;;  %v1541_v16 = vstv %s2304_s29 }
 0x37a   : > { %v1565_v25 = vadd.f32 %v1564_v19, %v1550_v8 }
 0x37e   : > { %v3047_v28 = vpop.f32.mrf.mxu0 }
 0x37f   : > { %v1512_v14 = vsel %vm1496_vm12, %v3047_v28, 0.0 }
 0x380   : > { %v1551_v23 = vmul.f32 %v1512_v14, %v1512_v14  ;;  %v1527_v30 = vadd.f32 %v1526_v22, %v1512_v14 }
 0x382   : > { %v1566_v37 = vadd.f32 %v1565_v25, %v1551_v23 }
 0x386   : > { %v3049_v29 = vpop.f32.mrf.mxu0 }
 0x387   : > { %v1513_v21 = vsel %vm1497_vm13, %v3049_v29, 0.0 }
 0x388   : > { %v1552_v33 = vmul.f32 %v1513_v21, %v1513_v21  ;;  %v1528_v38 = vadd.f32 %v1527_v30, %v1513_v21 }
 0x38a   : > { %v1567_v42 = vadd.f32 %v1566_v37, %v1552_v33 }
 0x38e   : > { %v3053_v32 = vpop.f32.mrf.mxu0 }
 0x38f   : > { %v1514_v26 = vsel %vm1498_vm14, %v3053_v32, 0.0 }
 0x390   : > { %v1553_v40 = vmul.f32 %v1514_v26, %v1514_v26  ;;  %v1529_v43 = vadd.f32 %v1528_v38, %v1514_v26 }
 0x392   : > { %v1568_v47 = vadd.f32 %v1567_v42, %v1553_v40 }
 0x396   : > { %v3066_v39 = vpop.f32.mrf.mxu0 }
 0x397   : > { %v1515_v36 = vsel %vm1499_vm15, %v3066_v39, 0.0 }
 0x398   : > { %v1554_v44 = vmul.f32 %v1515_v36, %v1515_v36  ;;  %v1530_v48 = vadd.f32 %v1529_v43, %v1515_v36 }
 0x39a   : > { %v1569_v52 = vadd.f32 %v1568_v47, %v1554_v44 }
 0x39e   : > { %v3081_v56 = vpop.f32.mrf.mxu0 }
 0x39f   : > { %v1516_v41 = vsel %vm1500_vm0, %v3081_v56, 0.0 }
 0x3a0   : > { %v1555_v49 = vmul.f32 %v1516_v41, %v1516_v41  ;;  %v1531_v53 = vadd.f32 %v1530_v48, %v1516_v41 }
 0x3a2   : > { %v1570_v55 = vadd.f32 %v1569_v52, %v1555_v49 }
 0x3a6   : > { %v3094_v18 = vpop.f32.mrf.mxu0 }
 0x3a7   : > { %v1517_v46 = vsel %vm1501_vm1, %v3094_v18, 0.0 }
 0x3a8   : > { %v1556_v54 = vmul.f32 %v1517_v46, %v1517_v46  ;;  %v1532_v57 = vadd.f32 %v1531_v53, %v1517_v46 }
 0x3aa   : > { %v1571_v59 = vadd.f32 %v1570_v55, %v1556_v54 }
 0x3ae   : > { %v3105_v45 = vpop.f32.mrf.mxu0 }
 0x3af   : > { %v1518_v51 = vsel %vm1502_vm2, %v3105_v45, 0.0 }
 0x3b0   : > { %v1557_v58 = vmul.f32 %v1518_v51, %v1518_v51  ;;  %v1533_v60 = vadd.f32 %v1532_v57, %v1518_v51 }
 0x3b2   : > { %v1572_v63 = vadd.f32 %v1571_v59, %v1557_v58 }
 0x3b6   : > { %v3112_v61 = vpop.f32.mrf.mxu0 }
 0x3b7   : > { %v1519_v62 = vsel %vm1503_vm3, %v3112_v61, 0.0 }
 0x3b8   : > { %v1534_v0 = vadd.f32 %v1533_v60, %v1519_v62  ;;  %v1558_v1 = vmul.f32 %v1519_v62, %v1519_v62 }
 0x3ba   : > { %v1535_v31 = vrot.slane %v1534_v0, 4  ;;  %v1573_v2 = vadd.f32 %v1572_v63, %v1558_v1 }
 0x3bc   : > { %v1536_v3 = vadd.f32 %v1535_v31, %v1534_v0  ;;  %v1574_v4 = vrot.slane %v1573_v2, 4 }
 0x3be   : > { %v1537_v5 = vrot.slane %v1536_v3, 2  ;;  %v1575_v6 = vadd.f32 %v1574_v4, %v1573_v2  ;;  %v2424_v2 = vld [vmem:[%s590_s27] ss:$0 sm:$0xff] }
 0x3c0   : > { %v1538_v7 = vadd.f32 %v1537_v5, %v1536_v3  ;;  %v1576_v8 = vrot.slane %v1575_v6, 2 }
 0x3c2   : > { %v1539_v14 = vrot.slane %v1538_v7, 1  ;;  %v1577_v35 = vadd.f32 %v1576_v8, %v1575_v6 }
 0x3c4   : > { %v1540_v17 = vadd.f32 %v1539_v14, %v1538_v7  ;;  %v1578_v19 = vrot.slane %v1577_v35, 1 }
 0x3c6   : > { %v1542_v21 = vmul.f32 %v1541_v16, %v1540_v17  ;;  %v1579_v22 = vadd.f32 %v1578_v19, %v1577_v35 }
 0x3c8   : > { %v1580_v23 = vmul.f32 %v1579_v22, %v1541_v16  ;;  %v1581_v24 = vmul.f32 %v1542_v21, %v1542_v21  ;;  %v1594_v26 = vsub.f32 %v3053_v32, %v1542_v21  ;;  %v1595_v30 = vsub.f32 %v3066_v39, %v1542_v21 }
 0x3c9   : > { %v1596_v33 = vsub.f32 %v3081_v56, %v1542_v21  ;;  %v1584_v42 = vsub.f32 %v3031_v9, %v1542_v21  ;;  %v1585_v44 = vsub.f32 %v3033_v10, %v1542_v21  ;;  %v1586_v32 = vsub.f32 %v3035_v11, %v1542_v21 }
 0x3ca   : > { %v1582_v25 = vsub.f32 %v1580_v23, %v1581_v24  ;;  %v1587_v39 = vsub.f32 %v3037_v12, %v1542_v21  ;;  %v1588_v56 = vsub.f32 %v3039_v13, %v1542_v21  ;;  %v1589_v46 = vsub.f32 %v3041_v15, %v1542_v21 }
 0x3cb   : > { %v1590_v47 = vsub.f32 %v3043_v20, %v1542_v21  ;;  %v1591_v9 = vsub.f32 %v3045_v27, %v1542_v21  ;;  %v1592_v49 = vsub.f32 %v3047_v28, %v1542_v21  ;;  %v1593_v50 = vsub.f32 %v3049_v29, %v1542_v21  ;;  %v2423_v27 = vld [vmem:[%s587_s2] ss:$0 sm:$0xff] }
 0x3cc   : > { %v1583_v34 = vmax.f32 %v1582_v25, 0.0  ;;  %v1597_v10 = vsub.f32 %v3094_v18, %v1542_v21  ;;  %v1598_v11 = vsub.f32 %v3105_v45, %v1542_v21  ;;  %v1599_v12 = vsub.f32 %v3112_v61, %v1542_v21 }
 0x3cd   : > { %v3132_v15 = vstv %s1668_s13 }
 0x3ce   : > { %v1600_v36 = vadd.f32 1e-05, %v1583_v34 }
 0x3d0   : > { %2427 = vrsqrt.f32 %v1600_v36  ;;  %vm1607_vm5 = vweird.f32 %v1600_v36 }
 0x3d6   : > { %v2428_v37 = vpop.eup %2427 }
 0x3d7   : > { %v1602_v38 = vmul.f32 %v2428_v37, %v1600_v36  ;;  %vm1608_vm4 = vweird.f32 %v2428_v37 }
 0x3d8   : > { %vm1609_vm6 = vmor %vm1607_vm5, %vm1608_vm4 }
 0x3d9   : > { %v1603_v40 = vmul.f32 %v2428_v37, %v1602_v38 }
 0x3db   : > { %v1604_v41 = vmul.f32 0.5, %v1603_v40 }
 0x3dd   : > { %v1605_v43 = vsub.f32 1.5, %v1604_v41 }
 0x3df   : > { %v1606_v48 = vmul.f32 %v2428_v37, %v1605_v43 }
 0x3e1   : > { %v1610_v13 = vsel %vm1609_vm6, %v2428_v37, %v1606_v48 }
 0x3e2   : > { %v1611_v20 = vmul.f32 %v1610_v13, %v1584_v42  ;;  %v1612_v51 = vmul.f32 %v1610_v13, %v1585_v44  ;;  %v1613_v52 = vmul.f32 %v1610_v13, %v1586_v32  ;;  %v1614_v53 = vmul.f32 %v1610_v13, %v1587_v39 }
 0x3e3   : > { %v1615_v28 = vmul.f32 %v1610_v13, %v1588_v56  ;;  %v1616_v29 = vmul.f32 %v1610_v13, %v1589_v46  ;;  %v1617_v18 = vmul.f32 %v1610_v13, %v1590_v47  ;;  %v1618_v54 = vmul.f32 %v1610_v13, %v1591_v9 }
 0x3e4   : > { %v1619_v45 = vmul.f32 %v1610_v13, %v1592_v49  ;;  %v1620_v55 = vmul.f32 %v1610_v13, %v1593_v50  ;;  %v1621_v57 = vmul.f32 %v1610_v13, %v1594_v26  ;;  %v1622_v58 = vmul.f32 %v1610_v13, %v1595_v30 }
 0x3e5   : > { %v1623_v59 = vmul.f32 %v1610_v13, %v1596_v33  ;;  %v1624_v60 = vmul.f32 %v1610_v13, %v1597_v10  ;;  %v1625_v61 = vmul.f32 %v1610_v13, %v1598_v11  ;;  %v1626_v62 = vmul.f32 %v1610_v13, %v1599_v12 }
 0x3e6   : > { %v1631_v63 = vmul.f32 %v2423_v27, %v1611_v20  ;;  %v1632_v0 = vmul.f32 %v2423_v27, %v1612_v51  ;;  %v1633_v1 = vmul.f32 %v2423_v27, %v1613_v52  ;;  %v1634_v31 = vmul.f32 %v2423_v27, %v1614_v53 }
 0x3e7   : > { %v1635_v3 = vmul.f32 %v2423_v27, %v1615_v28  ;;  %v1636_v4 = vmul.f32 %v2423_v27, %v1616_v29  ;;  %v1637_v5 = vmul.f32 %v2423_v27, %v1617_v18  ;;  %v1638_v6 = vmul.f32 %v2423_v27, %v1618_v54 }
 0x3e8   : > { %v1639_v7 = vmul.f32 %v2423_v27, %v1619_v45  ;;  %v1640_v8 = vmul.f32 %v2423_v27, %v1620_v55  ;;  %v1641_v14 = vmul.f32 %v2423_v27, %v1621_v57  ;;  %v1642_v35 = vmul.f32 %v2423_v27, %v1622_v58 }
 0x3e9   : > { %v1643_v16 = vmul.f32 %v2423_v27, %v1623_v59  ;;  %v1644_v17 = vmul.f32 %v2423_v27, %v1624_v60  ;;  %v1645_v19 = vmul.f32 %v2423_v27, %v1625_v61  ;;  %v1646_v21 = vmul.f32 %v2423_v27, %v1626_v62 }
 0x3ea   : > { %v1651_v22 = vadd.f32 %v2424_v2, %v1631_v63  ;;  %v1652_v23 = vadd.f32 %v2424_v2, %v1632_v0  ;;  %v1653_v24 = vadd.f32 %v2424_v2, %v1633_v1  ;;  %v1654_v25 = vadd.f32 %v2424_v2, %v1634_v31 }
 0x3eb   : > { %v1655_v26 = vadd.f32 %v2424_v2, %v1635_v3  ;;  %v1656_v30 = vadd.f32 %v2424_v2, %v1636_v4  ;;  %v1657_v33 = vadd.f32 %v2424_v2, %v1637_v5  ;;  %v1658_v34 = vadd.f32 %v2424_v2, %v1638_v6 }
 0x3ec   : > { %v1659_v36 = vadd.f32 %v2424_v2, %v1639_v7  ;;  %v1660_v37 = vadd.f32 %v2424_v2, %v1640_v8  ;;  %v1661_v38 = vadd.f32 %v2424_v2, %v1641_v14  ;;  %v1662_v40 = vadd.f32 %v2424_v2, %v1642_v35 }
 0x3ed   : > { %v1663_v41 = vadd.f32 %v2424_v2, %v1643_v16  ;;  %v1664_v42 = vadd.f32 %v2424_v2, %v1644_v17  ;;  %v1665_v43 = vadd.f32 %v2424_v2, %v1645_v19  ;;  %v1666_v44 = vadd.f32 %v2424_v2, %v1646_v21 }
 0x3ee   : > { %v1670_v32 = vmax.f32 %v1651_v22, %v3132_v15  ;;  %v1671_v39 = vmax.f32 %v1652_v23, %v3132_v15  ;;  %v1672_v56 = vmax.f32 %v1653_v24, %v3132_v15  ;;  %v1673_v46 = vmax.f32 %v1654_v25, %v3132_v15 }
 0x3ef   : > { %v1674_v47 = vmax.f32 %v1655_v26, %v3132_v15  ;;  %v1675_v48 = vmax.f32 %v1656_v30, %v3132_v15  ;;  %v1676_v9 = vmax.f32 %v1657_v33, %v3132_v15  ;;  %v1677_v49 = vmax.f32 %v1658_v34, %v3132_v15 }
 0x3f0   : > { %v1678_v50 = vmax.f32 %v1659_v36, %v3132_v15  ;;  %v1679_v10 = vmax.f32 %v1660_v37, %v3132_v15  ;;  %v1680_v11 = vmax.f32 %v1661_v38, %v3132_v15  ;;  %v1681_v12 = vmax.f32 %v1662_v40, %v3132_v15 }
 0x3f1   : > { %v1682_v13 = vmax.f32 %v1663_v41, %v3132_v15  ;;  %v1683_v20 = vmax.f32 %v1664_v42, %v3132_v15  ;;  %v1684_v51 = vmax.f32 %v1665_v43, %v3132_v15  ;;  %v2235_v52 = vpack.c.bf16 %v1671_v39, %v1670_v32 }
 0x3f2   : > { %v2240_v53 = vpack.c.bf16 %v1673_v46, %v1672_v56  ;;  %v2245_v27 = vpack.c.bf16 %v1675_v48, %v1674_v47  ;;  %v1685_v28 = vmax.f32 %v1666_v44, %v3132_v15  ;;  %v2250_v29 = vpack.c.bf16 %v1677_v49, %v1676_v9 }
 0x3f3   : > { %v2260_v18 = vpack.c.bf16 %v1681_v12, %v1680_v11  ;;  %v2265_v54 = vpack.c.bf16 %v1683_v20, %v1682_v13  ;;  %2236 = vst [vmem:[#allocation2] sm:$0xff] %v2235_v52   ;;  %v2255_v45 = vpack.c.bf16 %v1679_v10, %v1678_v50 }
 0x3f4   : > { %2272 = vst [vmem:[#allocation2 + $0x8] sm:$0xff] %v2240_v53   ;;  %v2270_v55 = vpack.c.bf16 %v1685_v28, %v1684_v51 }
 0x3f5   : > { %2273 = vst [vmem:[#allocation2 + $0x10] sm:$0xff] %v2245_v27  }
 0x3f6   : > { %2274 = vst [vmem:[#allocation2 + $0x18] sm:$0xff] %v2250_v29   ;;  %1720 = sbr.rel (%p2167_p4) target bundleno = 1035 (0x40b), region = 104 }
 0x3f7   : > { %2275 = vst [vmem:[#allocation2 + $0x20] sm:$0xff] %v2255_v45  }
 0x3f8   : > { %2276 = vst [vmem:[#allocation2 + $0x28] sm:$0xff] %v2260_v18  }
 0x3f9   : > { %2277 = vst [vmem:[#allocation2 + $0x30] sm:$0xff] %v2265_v54  }
 0x3fa   : > { %2278 = vst [vmem:[#allocation2 + $0x38] sm:$0xff] %v2270_v55  }
 0x3fb   : > { %1721 = vst [vmem:[#allocation17] sm:$0xff] %v1670_v32 }
 0x3fc   : > { %1722 = vst [vmem:[#allocation17 + $0x8] sm:$0xff] %v1671_v39 }
 0x3fd   : > { %1723 = vst [vmem:[#allocation17 + $0x10] sm:$0xff] %v1672_v56 }
 0x3fe   : > { %1724 = vst [vmem:[#allocation17 + $0x18] sm:$0xff] %v1673_v46 }
 0x3ff   : > { %1725 = vst [vmem:[#allocation17 + $0x20] sm:$0xff] %v1674_v47 }
 0x400   : > { %1726 = vst [vmem:[#allocation17 + $0x28] sm:$0xff] %v1675_v48 }
 0x401   : > { %1727 = vst [vmem:[#allocation17 + $0x30] sm:$0xff] %v1676_v9 }
 0x402   : > { %1728 = vst [vmem:[#allocation17 + $0x38] sm:$0xff] %v1677_v49 }
 0x403   : > { %1729 = vst [vmem:[#allocation17 + $0x40] sm:$0xff] %v1678_v50 }
 0x404   : > { %1730 = vst [vmem:[#allocation17 + $0x48] sm:$0xff] %v1679_v10 }
 0x405   : > { %1731 = vst [vmem:[#allocation17 + $0x50] sm:$0xff] %v1680_v11 }
 0x406   : > { %1732 = vst [vmem:[#allocation17 + $0x58] sm:$0xff] %v1681_v12 }
 0x407   : > { %1733 = vst [vmem:[#allocation17 + $0x60] sm:$0xff] %v1682_v13 }
 0x408   : > { %1734 = vst [vmem:[#allocation17 + $0x68] sm:$0xff] %v1683_v20 }
 0x409   : > { %1735 = vst [vmem:[#allocation17 + $0x70] sm:$0xff] %v1684_v51 }
 0x40a   : > { %1736 = vst [vmem:[#allocation17 + $0x78] sm:$0xff] %v1685_v28 }
 0x40b PF: > { %p2363_p5 = scmp.eq.s32.totalorder %s2836_s0, 2  ;;  %s3220_s30 = sld [smem:[#allocation30_spill]] }
 0x40c   : > { %s2741_s23 = smov [#allocation17]   ;;  %s2742_s25 = smov 128  }
 0x40d   : > { %s1742_s2 = sshll.u32 %s2741_s23, 4  ;;  %s2743_s26 = smov 8   ;;  %s1743_s2 = int_to_ptr.vmem [resolvable:$true] %s1742_s2 }
 0x411   : > { %s1744_s14 = sshll.u32 %s3220_s30, 4  ;;  %s1745_s14 = int_to_ptr.hbm [resolvable:$true] %s1744_s14 }
 0x412   : > { %2328 = dma.vmem_to_hbm [thread:$0]  (%p2363_p5), %s1743_s2, 2048, %s1745_s14, [#allocation8], %s2742_s25, %s2742_s25, %s2743_s26  }
 0x413   : > { %2708 = dma.done.wait (%p2363_p5), [#allocation8], 2048  }
 0x414   : > { %2710 = vsyncadd (%p2363_p5), [#allocation8], 4294965248 }
 0x415 PF: > { %s26_s24 = sadd.s32 1, %s2733_s24   ;;  %s3221_s27 = sld [smem:[#allocation23_spill]] }
 0x416   : > { %p23_p6 = scmp.ge.s32.totalorder %s26_s24, 5   ;;  %s3222_s21 = sld [smem:[#allocation26_spill]] }
 0x417   : > { %s3223_s22 = sld [smem:[#allocation24_spill]]  ;;  %s3225_s19 = smov %s2717_s20 }
 0x418   : > { %s3224_s23 = sld [smem:[#allocation25_spill]]  ;;  %25 = sbr.rel (!%p23_p6) target bundleno = 12 (0xc), region = 162 }
 0x41b   : > { %s3226_s20 = smov %s3221_s27 }
 0x41d   :  { %1761 = vsyncpa [#allocation7], 1 }
 0x41e   :  { %1763 = vsyncpa [#allocation7 + $0x1], 1 }
 0x41f   :  { %1764 = vsyncpa [#allocation10], 1 }
 0x420   :  { %1765 = vsyncpa [#allocation13], 1 }
 0x421   :  { %1766 = vsyncpa [#allocation8], 1 }
 0x422   :  { %1768 = vsyncpa [#allocation8 + $0x1], 1 }

</bundles_post_ra>
